<compile_context>
chip_gen: v5e
topology: v5e:2x2
jax: 0.10.0
libtpu: 0.0.40
codegen_flags: <defaults>
</compile_context>

<pallas_src>
import functools

import jax
import jax.numpy as jnp
from jax.experimental import pallas as pl
from jax.experimental.pallas import tpu as pltpu


def _encoder_layer_kernel(x_ref, wqkv_ref, bqkv_ref, wo_ref, bo_ref,
                          w1_ref, b1_ref, w2_ref, b2_ref, ln_ref,
                          o_ref, *, n_head):
    """Post-norm TransformerEncoderLayer on one (S, E, T) block.

    Layout: channels (E) map to sublanes, spatial positions (T) map to lanes.
    x_ref[j] is batch member j; attention mixes the S batch members
    independently at every lane (spatial position).
    """
    S, E, T = x_ref.shape
    H = n_head
    D = E // H
    scale = 1.0 / float(D) ** 0.5

    wqkv = wqkv_ref[...]                      # (3E, E) matmul dtype
    bqkv = bqkv_ref[...]                      # (3E, 1) f32
    wo, bo = wo_ref[...], bo_ref[...]
    w1, b1 = w1_ref[...], b1_ref[...]
    w2, b2 = w2_ref[...], b2_ref[...]
    ln = ln_ref[...]                          # (E, 4): [gamma1, beta1, gamma2, beta2]
    g1, be1, g2, be2 = ln[:, 0:1], ln[:, 1:2], ln[:, 2:3], ln[:, 3:4]

    mm = wqkv.dtype                           # matmul operand dtype (f32 or bf16)

    # ---- fused QKV projection: one matmul per batch member --------------------
    q, k, v = [], [], []
    for j in range(S):
        qkv = jnp.dot(wqkv, x_ref[j].astype(mm),
                      preferred_element_type=jnp.float32) + bqkv        # (3E, T)
        q.append(qkv[0 * E:1 * E, :])
        k.append(qkv[1 * E:2 * E, :])
        v.append(qkv[2 * E:3 * E, :])

    def head_sum(p, h):
        # Sum of the D sublanes belonging to head h -> (1, T).  XLU reduce; no MXU.
        return jnp.sum(p[h * D:(h + 1) * D, :], axis=0, keepdims=True)

    # ---- multi-head self-attention over the S (original batch) axis -----------
    ctx = []
    if S == 2:
        # 2-key softmax == sigmoid of the score difference.
        kd = k[1] - k[0]
        vd = v[1] - v[0]
        for j in range(S):
            prod = q[j] * kd                                            # (E, T)
            rows = []
            for h in range(H):
                s_d = head_sum(prod, h) * scale                         # (1, T)
                p1 = 1.0 / (1.0 + jnp.exp(-s_d))                        # sigmoid
                rows.append(jnp.broadcast_to(p1, (D, T)))
            p1_b = jnp.concatenate(rows, axis=0)                        # (E, T)
            ctx.append(v[0] + p1_b * vd)
    else:
        # General S: numerically-stable softmax over the S keys, per head.
        for j in range(S):
            prods = [q[j] * k[jp] for jp in range(S)]
            head_ctx = []
            for h in range(H):
                s_h = [head_sum(p, h) * scale for p in prods]
                m = s_h[0]
                for jp in range(1, S):
                    m = jnp.maximum(m, s_h[jp])
                e_h = [jnp.exp(s - m) for s in s_h]
                den = e_h[0]
                for jp in range(1, S):
                    den = den + e_h[jp]
                inv = 1.0 / den
                acc = jnp.zeros((D, T), jnp.float32)
                for jp in range(S):
                    w_jp = jnp.broadcast_to(e_h[jp] * inv, (D, T))
                    acc = acc + w_jp * v[jp][h * D:(h + 1) * D, :]
                head_ctx.append(acc)
            ctx.append(jnp.concatenate(head_ctx, axis=0))

    inv_e = 1.0 / float(E)

    def layer_norm(y, gamma, beta):
        # One-pass LayerNorm over the channel (sublane) axis.
        mu = jnp.sum(y, axis=0, keepdims=True) * inv_e
        ms = jnp.sum(y * y, axis=0, keepdims=True) * inv_e
        var = ms - mu * mu
        return (y - mu) * jax.lax.rsqrt(var + 1e-5) * gamma + beta

    # ---- out-proj + residual/LN + ReLU FFN + residual/LN, per batch member ----
    for j in range(S):
        a = jnp.dot(wo, ctx[j].astype(mm),
                    preferred_element_type=jnp.float32) + bo            # (E, T)
        # TODO(synk): dropout (p=0.5) layers are identity (eval mode); training-
        # mode dropout is not implemented.
        y = layer_norm(x_ref[j].astype(jnp.float32) + a, g1, be1)
        f = jnp.dot(w1, y.astype(mm), preferred_element_type=jnp.float32) + b1
        f = jnp.maximum(f, 0.0)
        f = jnp.dot(w2, f.astype(mm), preferred_element_type=jnp.float32) + b2
        z = layer_norm(y + f, g2, be2)
        o_ref[j] = z.astype(o_ref.dtype)


def _pick_spatial_tile(S, E, F, HW, budget_bytes=24 << 20):
    """Largest lane-aligned spatial tile whose live f32 footprint (double-buffered
    I/O blocks + per-member q/k/v/ctx/FFN intermediates) stays under a scoped-VMEM
    budget.  The 24 MiB default leaves headroom below v7x's 32 MiB scoped limit."""
    per_col = 4 * (12 * S * E + 4 * F)        # ~ live f32 bytes per spatial column
    if HW * per_col <= budget_bytes:
        return HW
    t = max(128, (budget_bytes // per_col) // 128 * 128)
    while t > 128 and HW % t != 0:
        t -= 128
    return t if HW % t == 0 else HW


def transformer_encoder_layer(x_bcs, params, n_head, *, spatial_tile=None,
                              matmul_dtype=jnp.float32, core_parallel=False):
    """x_bcs: (S, E, HW) float32, channel-major.  Self-attention runs over the S
    (batch) axis independently at each spatial column.  Returns (S, E, HW).

    matmul_dtype=jnp.bfloat16 casts the weight matrices / matmul operands to bf16
    (f32 accumulate) for v6e/v7x.  core_parallel=True marks the spatial grid axis
    CORE_PARALLEL to shard it over v7x's two TensorCores (only worthwhile once
    per-core work exceeds the per-grid-step overhead)."""
    S, E, HW = x_bcs.shape
    F = params['w1'].shape[0]
    assert E % n_head == 0

    if spatial_tile is None:
        spatial_tile = _pick_spatial_tile(S, E, F, HW)
    assert HW % spatial_tile == 0, "spatial_tile must divide h*w"
    assert spatial_tile == HW or spatial_tile % 128 == 0, (
        "partial spatial tiles must be lane-aligned (multiple of 128)")
    grid = (HW // spatial_tile,)

    kernel = functools.partial(_encoder_layer_kernel, n_head=n_head)

    def rep(arr):
        return pl.BlockSpec(arr.shape, lambda i, n=arr.ndim: (0,) * n)

    wqkv = params['wqkv'].astype(matmul_dtype)
    wo = params['wo'].astype(matmul_dtype)
    w1 = params['w1'].astype(matmul_dtype)
    w2 = params['w2'].astype(matmul_dtype)

    sem = (pltpu.CORE_PARALLEL,) if core_parallel else ("parallel",)

    out = pl.pallas_call(
        kernel,
        out_shape=jax.ShapeDtypeStruct((S, E, HW), x_bcs.dtype),
        grid=grid,
        in_specs=[
            pl.BlockSpec((S, E, spatial_tile), lambda i: (0, 0, i)),   # x block
            rep(wqkv), rep(params['bqkv']),
            rep(wo), rep(params['bo']),
            rep(w1), rep(params['b1']),
            rep(w2), rep(params['b2']),
            rep(params['ln']),
        ],
        out_specs=pl.BlockSpec((S, E, spatial_tile), lambda i: (0, 0, i)),
        compiler_params=pltpu.CompilerParams(dimension_semantics=sem),
    )(x_bcs, wqkv, params['bqkv'], wo, params['bo'],
      w1, params['b1'], w2, params['b2'], params['ln'])
    return out


def batchformer_forward(x, params, n_head, first=False, **kwargs):
    """Mirrors BatchFormer.forward.  x: (b, c, h, w) float32."""
    if first:
        org = x
        xin = x
    else:
        dim = x.shape[0] // 2
        org = x[:dim]
        xin = x[dim:]
    b, c, h, w = xin.shape
    # PyTorch's view(b,c,-1).permute(2,0,1) / permute(1,2,0).view(...) pair is
    # absorbed into the kernel's channel-major layout — only free contiguous
    # reshapes here, no transposed HBM copies.
    seq = xin.reshape(b, c, h * w)
    out = transformer_encoder_layer(seq, params, n_head, **kwargs)
    out = out.reshape(b, c, h, w)
    return jnp.concatenate([org, out], axis=0)


def init_params(key, in_channel, forward_dim):
    """Parameter shapes mirror torch.nn.TransformerEncoderLayer storage
    ((out, in) weights, fused QKV), so the kernel computes W @ x directly in the
    channel-major layout."""
    E, F = in_channel, forward_dim
    ks = jax.random.split(key, 6)
    std = 0.1
    return {
        'wqkv': std * jax.random.normal(ks[0], (3 * E, E), jnp.float32),
        'bqkv': jnp.zeros((3 * E, 1), jnp.float32),
        'wo':   std * jax.random.normal(ks[1], (E, E), jnp.float32),
        'bo':   jnp.zeros((E, 1), jnp.float32),
        'w1':   std * jax.random.normal(ks[2], (F, E), jnp.float32),
        'b1':   0.01 * jax.random.normal(ks[3], (F, 1), jnp.float32),
        'w2':   std * jax.random.normal(ks[4], (E, F), jnp.float32),
        'b2':   0.01 * jax.random.normal(ks[5], (E, 1), jnp.float32),
        # packed LayerNorm params, columns = [gamma1, beta1, gamma2, beta2]
        'ln': jnp.concatenate([jnp.ones((E, 1), jnp.float32),
                               jnp.zeros((E, 1), jnp.float32),
                               jnp.ones((E, 1), jnp.float32),
                               jnp.zeros((E, 1), jnp.float32)], axis=1),
    }


if __name__ == "__main__":
    key = jax.random.PRNGKey(0)
    kx, kp = jax.random.split(key)

    # BatchFormer(in_channel=16, n_head=4, forward_dim=32); input x: (4, 16, 8, 8)
    B, C, H, W = 4, 16, 8, 8
    N_HEAD, FWD = 4, 32

    x = jax.random.normal(kx, (B, C, H, W), jnp.float32)
    params = init_params(kp, C, FWD)

    out = batchformer_forward(x, params, N_HEAD, first=False)
    out = jax.block_until_ready(out)
    assert out.shape == (B, C, H, W), out.shape
    assert jnp.isfinite(out).all()
    print("KERNEL_OK")
</pallas_src>

<mosaic_0001>
module attributes {stable_mosaic.version = 11 : i64} {
  func.func @_encoder_layer_kernel(%arg0: i32, %arg1: memref<2x16x64xf32, #tpu.memory_space<vmem>>, %arg2: memref<48x16xf32, #tpu.memory_space<vmem>>, %arg3: memref<48x1xf32, #tpu.memory_space<vmem>>, %arg4: memref<16x16xf32, #tpu.memory_space<vmem>>, %arg5: memref<16x1xf32, #tpu.memory_space<vmem>>, %arg6: memref<32x16xf32, #tpu.memory_space<vmem>>, %arg7: memref<32x1xf32, #tpu.memory_space<vmem>>, %arg8: memref<16x32xf32, #tpu.memory_space<vmem>>, %arg9: memref<16x1xf32, #tpu.memory_space<vmem>>, %arg10: memref<16x4xf32, #tpu.memory_space<vmem>>, %arg11: memref<2x16x64xf32, #tpu.memory_space<vmem>>) attributes {dimension_semantics = [#tpu.dimension_semantics<parallel>], iteration_bounds = array<i64: 1>, scalar_prefetch = 0 : i64, scratch_operands = 0 : i64, tpu.core_type = #tpu.core_type<tc>, window_params = [{transform_indices = @transform_0, window_bounds = array<i64: 2, 16, 64>}, {pipeline_mode = #tpu.pipeline_mode<synchronous>, transform_indices = @transform_1, window_bounds = array<i64: 48, 16>}, {pipeline_mode = #tpu.pipeline_mode<synchronous>, transform_indices = @transform_2, window_bounds = array<i64: 48, 1>}, {pipeline_mode = #tpu.pipeline_mode<synchronous>, transform_indices = @transform_3, window_bounds = array<i64: 16, 16>}, {pipeline_mode = #tpu.pipeline_mode<synchronous>, transform_indices = @transform_4, window_bounds = array<i64: 16, 1>}, {pipeline_mode = #tpu.pipeline_mode<synchronous>, transform_indices = @transform_5, window_bounds = array<i64: 32, 16>}, {pipeline_mode = #tpu.pipeline_mode<synchronous>, transform_indices = @transform_6, window_bounds = array<i64: 32, 1>}, {pipeline_mode = #tpu.pipeline_mode<synchronous>, transform_indices = @transform_7, window_bounds = array<i64: 16, 32>}, {pipeline_mode = #tpu.pipeline_mode<synchronous>, transform_indices = @transform_8, window_bounds = array<i64: 16, 1>}, {pipeline_mode = #tpu.pipeline_mode<synchronous>, transform_indices = @transform_9, window_bounds = array<i64: 16, 4>}, {transform_indices = @transform_10, window_bounds = array<i64: 2, 16, 64>}]} {
    %c0 = arith.constant 0 : index
    %c0_0 = arith.constant 0 : index
    %0 = vector.load %arg2[%c0, %c0_0] : memref<48x16xf32, #tpu.memory_space<vmem>>, vector<48x16xf32>
    %c0_1 = arith.constant 0 : index
    %c0_2 = arith.constant 0 : index
    %1 = vector.load %arg3[%c0_1, %c0_2] : memref<48x1xf32, #tpu.memory_space<vmem>>, vector<48x1xf32>
    %c0_3 = arith.constant 0 : index
    %c0_4 = arith.constant 0 : index
    %2 = vector.load %arg4[%c0_3, %c0_4] : memref<16x16xf32, #tpu.memory_space<vmem>>, vector<16x16xf32>
    %c0_5 = arith.constant 0 : index
    %c0_6 = arith.constant 0 : index
    %3 = vector.load %arg5[%c0_5, %c0_6] : memref<16x1xf32, #tpu.memory_space<vmem>>, vector<16x1xf32>
    %c0_7 = arith.constant 0 : index
    %c0_8 = arith.constant 0 : index
    %4 = vector.load %arg6[%c0_7, %c0_8] : memref<32x16xf32, #tpu.memory_space<vmem>>, vector<32x16xf32>
    %c0_9 = arith.constant 0 : index
    %c0_10 = arith.constant 0 : index
    %5 = vector.load %arg7[%c0_9, %c0_10] : memref<32x1xf32, #tpu.memory_space<vmem>>, vector<32x1xf32>
    %c0_11 = arith.constant 0 : index
    %c0_12 = arith.constant 0 : index
    %6 = vector.load %arg8[%c0_11, %c0_12] : memref<16x32xf32, #tpu.memory_space<vmem>>, vector<16x32xf32>
    %c0_13 = arith.constant 0 : index
    %c0_14 = arith.constant 0 : index
    %7 = vector.load %arg9[%c0_13, %c0_14] : memref<16x1xf32, #tpu.memory_space<vmem>>, vector<16x1xf32>
    %c0_15 = arith.constant 0 : index
    %c0_16 = arith.constant 0 : index
    %8 = vector.load %arg10[%c0_15, %c0_16] : memref<16x4xf32, #tpu.memory_space<vmem>>, vector<16x4xf32>
    %9 = vector.extract_strided_slice %8 {offsets = [0, 0], sizes = [16, 1], strides = [1, 1]} : vector<16x4xf32> to vector<16x1xf32>
    %10 = vector.extract_strided_slice %8 {offsets = [0, 1], sizes = [16, 1], strides = [1, 1]} : vector<16x4xf32> to vector<16x1xf32>
    %11 = vector.extract_strided_slice %8 {offsets = [0, 2], sizes = [16, 1], strides = [1, 1]} : vector<16x4xf32> to vector<16x1xf32>
    %12 = vector.extract_strided_slice %8 {offsets = [0, 3], sizes = [16, 1], strides = [1, 1]} : vector<16x4xf32> to vector<16x1xf32>
    %c0_17 = arith.constant 0 : index
    %c0_18 = arith.constant 0 : index
    %c0_19 = arith.constant 0 : index
    %13 = vector.load %arg1[%c0_17, %c0_18, %c0_19] : memref<2x16x64xf32, #tpu.memory_space<vmem>>, vector<1x16x64xf32>
    %14 = vector.shape_cast %13 : vector<1x16x64xf32> to vector<16x64xf32>
    %cst = arith.constant dense<0.000000e+00> : vector<48x64xf32>
    %15 = tpu.matmul %0, %14, %cst {dimension_numbers = #tpu.dot_dimension_numbers<[1], [0], [0], [1], [0, 0, 1, 1], [], []>} : vector<48x16xf32>, vector<16x64xf32>, vector<48x64xf32> -> vector<48x64xf32>
    %16 = vector.broadcast %1 : vector<48x1xf32> to vector<48x64xf32>
    %17 = arith.addf %15, %16 : vector<48x64xf32>
    %18 = vector.extract_strided_slice %17 {offsets = [0, 0], sizes = [16, 64], strides = [1, 1]} : vector<48x64xf32> to vector<16x64xf32>
    %19 = vector.extract_strided_slice %17 {offsets = [16, 0], sizes = [16, 64], strides = [1, 1]} : vector<48x64xf32> to vector<16x64xf32>
    %20 = vector.extract_strided_slice %17 {offsets = [32, 0], sizes = [16, 64], strides = [1, 1]} : vector<48x64xf32> to vector<16x64xf32>
    %c1 = arith.constant 1 : index
    %c0_20 = arith.constant 0 : index
    %c0_21 = arith.constant 0 : index
    %21 = vector.load %arg1[%c1, %c0_20, %c0_21] : memref<2x16x64xf32, #tpu.memory_space<vmem>>, vector<1x16x64xf32>
    %22 = vector.shape_cast %21 : vector<1x16x64xf32> to vector<16x64xf32>
    %cst_22 = arith.constant dense<0.000000e+00> : vector<48x64xf32>
    %23 = tpu.matmul %0, %22, %cst_22 {dimension_numbers = #tpu.dot_dimension_numbers<[1], [0], [0], [1], [0, 0, 1, 1], [], []>} : vector<48x16xf32>, vector<16x64xf32>, vector<48x64xf32> -> vector<48x64xf32>
    %24 = vector.broadcast %1 : vector<48x1xf32> to vector<48x64xf32>
    %25 = arith.addf %23, %24 : vector<48x64xf32>
    %26 = vector.extract_strided_slice %25 {offsets = [0, 0], sizes = [16, 64], strides = [1, 1]} : vector<48x64xf32> to vector<16x64xf32>
    %27 = vector.extract_strided_slice %25 {offsets = [16, 0], sizes = [16, 64], strides = [1, 1]} : vector<48x64xf32> to vector<16x64xf32>
    %28 = vector.extract_strided_slice %25 {offsets = [32, 0], sizes = [16, 64], strides = [1, 1]} : vector<48x64xf32> to vector<16x64xf32>
    %29 = arith.subf %27, %19 : vector<16x64xf32>
    %30 = arith.subf %28, %20 : vector<16x64xf32>
    %31 = arith.mulf %18, %29 : vector<16x64xf32>
    %32 = vector.extract_strided_slice %31 {offsets = [0, 0], sizes = [4, 64], strides = [1, 1]} : vector<16x64xf32> to vector<4x64xf32>
    %cst_23 = arith.constant dense<0.000000e+00> : vector<64xf32>
    %33 = vector.multi_reduction <add>, %32, %cst_23 [0] : vector<4x64xf32> to vector<64xf32>
    %34 = vector.shape_cast %33 : vector<64xf32> to vector<1x64xf32>
    %cst_24 = arith.constant 5.000000e-01 : f32
    %35 = vector.broadcast %cst_24 : f32 to vector<1x64xf32>
    %36 = arith.mulf %34, %35 : vector<1x64xf32>
    %cst_25 = arith.constant 0.000000e+00 : f32
    %37 = vector.broadcast %cst_25 : f32 to vector<1x64xf32>
    %38 = arith.subf %37, %36 : vector<1x64xf32>
    %39 = math.exp %38 : vector<1x64xf32>
    %cst_26 = arith.constant 1.000000e+00 : f32
    %40 = vector.broadcast %cst_26 : f32 to vector<1x64xf32>
    %41 = arith.addf %40, %39 : vector<1x64xf32>
    %cst_27 = arith.constant 1.000000e+00 : f32
    %42 = vector.broadcast %cst_27 : f32 to vector<1x64xf32>
    %43 = arith.divf %42, %41 : vector<1x64xf32>
    %44 = vector.shape_cast %43 : vector<1x64xf32> to vector<1x64xf32>
    %45 = vector.broadcast %44 : vector<1x64xf32> to vector<4x64xf32>
    %46 = vector.extract_strided_slice %31 {offsets = [4, 0], sizes = [4, 64], strides = [1, 1]} : vector<16x64xf32> to vector<4x64xf32>
    %cst_28 = arith.constant dense<0.000000e+00> : vector<64xf32>
    %47 = vector.multi_reduction <add>, %46, %cst_28 [0] : vector<4x64xf32> to vector<64xf32>
    %48 = vector.shape_cast %47 : vector<64xf32> to vector<1x64xf32>
    %cst_29 = arith.constant 5.000000e-01 : f32
    %49 = vector.broadcast %cst_29 : f32 to vector<1x64xf32>
    %50 = arith.mulf %48, %49 : vector<1x64xf32>
    %cst_30 = arith.constant 0.000000e+00 : f32
    %51 = vector.broadcast %cst_30 : f32 to vector<1x64xf32>
    %52 = arith.subf %51, %50 : vector<1x64xf32>
    %53 = math.exp %52 : vector<1x64xf32>
    %cst_31 = arith.constant 1.000000e+00 : f32
    %54 = vector.broadcast %cst_31 : f32 to vector<1x64xf32>
    %55 = arith.addf %54, %53 : vector<1x64xf32>
    %cst_32 = arith.constant 1.000000e+00 : f32
    %56 = vector.broadcast %cst_32 : f32 to vector<1x64xf32>
    %57 = arith.divf %56, %55 : vector<1x64xf32>
    %58 = vector.shape_cast %57 : vector<1x64xf32> to vector<1x64xf32>
    %59 = vector.broadcast %58 : vector<1x64xf32> to vector<4x64xf32>
    %60 = vector.extract_strided_slice %31 {offsets = [8, 0], sizes = [4, 64], strides = [1, 1]} : vector<16x64xf32> to vector<4x64xf32>
    %cst_33 = arith.constant dense<0.000000e+00> : vector<64xf32>
    %61 = vector.multi_reduction <add>, %60, %cst_33 [0] : vector<4x64xf32> to vector<64xf32>
    %62 = vector.shape_cast %61 : vector<64xf32> to vector<1x64xf32>
    %cst_34 = arith.constant 5.000000e-01 : f32
    %63 = vector.broadcast %cst_34 : f32 to vector<1x64xf32>
    %64 = arith.mulf %62, %63 : vector<1x64xf32>
    %cst_35 = arith.constant 0.000000e+00 : f32
    %65 = vector.broadcast %cst_35 : f32 to vector<1x64xf32>
    %66 = arith.subf %65, %64 : vector<1x64xf32>
    %67 = math.exp %66 : vector<1x64xf32>
    %cst_36 = arith.constant 1.000000e+00 : f32
    %68 = vector.broadcast %cst_36 : f32 to vector<1x64xf32>
    %69 = arith.addf %68, %67 : vector<1x64xf32>
    %cst_37 = arith.constant 1.000000e+00 : f32
    %70 = vector.broadcast %cst_37 : f32 to vector<1x64xf32>
    %71 = arith.divf %70, %69 : vector<1x64xf32>
    %72 = vector.shape_cast %71 : vector<1x64xf32> to vector<1x64xf32>
    %73 = vector.broadcast %72 : vector<1x64xf32> to vector<4x64xf32>
    %74 = vector.extract_strided_slice %31 {offsets = [12, 0], sizes = [4, 64], strides = [1, 1]} : vector<16x64xf32> to vector<4x64xf32>
    %cst_38 = arith.constant dense<0.000000e+00> : vector<64xf32>
    %75 = vector.multi_reduction <add>, %74, %cst_38 [0] : vector<4x64xf32> to vector<64xf32>
    %76 = vector.shape_cast %75 : vector<64xf32> to vector<1x64xf32>
    %cst_39 = arith.constant 5.000000e-01 : f32
    %77 = vector.broadcast %cst_39 : f32 to vector<1x64xf32>
    %78 = arith.mulf %76, %77 : vector<1x64xf32>
    %cst_40 = arith.constant 0.000000e+00 : f32
    %79 = vector.broadcast %cst_40 : f32 to vector<1x64xf32>
    %80 = arith.subf %79, %78 : vector<1x64xf32>
    %81 = math.exp %80 : vector<1x64xf32>
    %cst_41 = arith.constant 1.000000e+00 : f32
    %82 = vector.broadcast %cst_41 : f32 to vector<1x64xf32>
    %83 = arith.addf %82, %81 : vector<1x64xf32>
    %cst_42 = arith.constant 1.000000e+00 : f32
    %84 = vector.broadcast %cst_42 : f32 to vector<1x64xf32>
    %85 = arith.divf %84, %83 : vector<1x64xf32>
    %86 = vector.shape_cast %85 : vector<1x64xf32> to vector<1x64xf32>
    %87 = vector.broadcast %86 : vector<1x64xf32> to vector<4x64xf32>
    %88 = tpu.concatenate %45, %59, %73, %87 in 0 : vector<4x64xf32>, vector<4x64xf32>, vector<4x64xf32>, vector<4x64xf32> -> vector<16x64xf32>
    %89 = arith.mulf %88, %30 : vector<16x64xf32>
    %90 = arith.addf %20, %89 : vector<16x64xf32>
    %91 = arith.mulf %26, %29 : vector<16x64xf32>
    %92 = vector.extract_strided_slice %91 {offsets = [0, 0], sizes = [4, 64], strides = [1, 1]} : vector<16x64xf32> to vector<4x64xf32>
    %cst_43 = arith.constant dense<0.000000e+00> : vector<64xf32>
    %93 = vector.multi_reduction <add>, %92, %cst_43 [0] : vector<4x64xf32> to vector<64xf32>
    %94 = vector.shape_cast %93 : vector<64xf32> to vector<1x64xf32>
    %cst_44 = arith.constant 5.000000e-01 : f32
    %95 = vector.broadcast %cst_44 : f32 to vector<1x64xf32>
    %96 = arith.mulf %94, %95 : vector<1x64xf32>
    %cst_45 = arith.constant 0.000000e+00 : f32
    %97 = vector.broadcast %cst_45 : f32 to vector<1x64xf32>
    %98 = arith.subf %97, %96 : vector<1x64xf32>
    %99 = math.exp %98 : vector<1x64xf32>
    %cst_46 = arith.constant 1.000000e+00 : f32
    %100 = vector.broadcast %cst_46 : f32 to vector<1x64xf32>
    %101 = arith.addf %100, %99 : vector<1x64xf32>
    %cst_47 = arith.constant 1.000000e+00 : f32
    %102 = vector.broadcast %cst_47 : f32 to vector<1x64xf32>
    %103 = arith.divf %102, %101 : vector<1x64xf32>
    %104 = vector.shape_cast %103 : vector<1x64xf32> to vector<1x64xf32>
    %105 = vector.broadcast %104 : vector<1x64xf32> to vector<4x64xf32>
    %106 = vector.extract_strided_slice %91 {offsets = [4, 0], sizes = [4, 64], strides = [1, 1]} : vector<16x64xf32> to vector<4x64xf32>
    %cst_48 = arith.constant dense<0.000000e+00> : vector<64xf32>
    %107 = vector.multi_reduction <add>, %106, %cst_48 [0] : vector<4x64xf32> to vector<64xf32>
    %108 = vector.shape_cast %107 : vector<64xf32> to vector<1x64xf32>
    %cst_49 = arith.constant 5.000000e-01 : f32
    %109 = vector.broadcast %cst_49 : f32 to vector<1x64xf32>
    %110 = arith.mulf %108, %109 : vector<1x64xf32>
    %cst_50 = arith.constant 0.000000e+00 : f32
    %111 = vector.broadcast %cst_50 : f32 to vector<1x64xf32>
    %112 = arith.subf %111, %110 : vector<1x64xf32>
    %113 = math.exp %112 : vector<1x64xf32>
    %cst_51 = arith.constant 1.000000e+00 : f32
    %114 = vector.broadcast %cst_51 : f32 to vector<1x64xf32>
    %115 = arith.addf %114, %113 : vector<1x64xf32>
    %cst_52 = arith.constant 1.000000e+00 : f32
    %116 = vector.broadcast %cst_52 : f32 to vector<1x64xf32>
    %117 = arith.divf %116, %115 : vector<1x64xf32>
    %118 = vector.shape_cast %117 : vector<1x64xf32> to vector<1x64xf32>
    %119 = vector.broadcast %118 : vector<1x64xf32> to vector<4x64xf32>
    %120 = vector.extract_strided_slice %91 {offsets = [8, 0], sizes = [4, 64], strides = [1, 1]} : vector<16x64xf32> to vector<4x64xf32>
    %cst_53 = arith.constant dense<0.000000e+00> : vector<64xf32>
    %121 = vector.multi_reduction <add>, %120, %cst_53 [0] : vector<4x64xf32> to vector<64xf32>
    %122 = vector.shape_cast %121 : vector<64xf32> to vector<1x64xf32>
    %cst_54 = arith.constant 5.000000e-01 : f32
    %123 = vector.broadcast %cst_54 : f32 to vector<1x64xf32>
    %124 = arith.mulf %122, %123 : vector<1x64xf32>
    %cst_55 = arith.constant 0.000000e+00 : f32
    %125 = vector.broadcast %cst_55 : f32 to vector<1x64xf32>
    %126 = arith.subf %125, %124 : vector<1x64xf32>
    %127 = math.exp %126 : vector<1x64xf32>
    %cst_56 = arith.constant 1.000000e+00 : f32
    %128 = vector.broadcast %cst_56 : f32 to vector<1x64xf32>
    %129 = arith.addf %128, %127 : vector<1x64xf32>
    %cst_57 = arith.constant 1.000000e+00 : f32
    %130 = vector.broadcast %cst_57 : f32 to vector<1x64xf32>
    %131 = arith.divf %130, %129 : vector<1x64xf32>
    %132 = vector.shape_cast %131 : vector<1x64xf32> to vector<1x64xf32>
    %133 = vector.broadcast %132 : vector<1x64xf32> to vector<4x64xf32>
    %134 = vector.extract_strided_slice %91 {offsets = [12, 0], sizes = [4, 64], strides = [1, 1]} : vector<16x64xf32> to vector<4x64xf32>
    %cst_58 = arith.constant dense<0.000000e+00> : vector<64xf32>
    %135 = vector.multi_reduction <add>, %134, %cst_58 [0] : vector<4x64xf32> to vector<64xf32>
    %136 = vector.shape_cast %135 : vector<64xf32> to vector<1x64xf32>
    %cst_59 = arith.constant 5.000000e-01 : f32
    %137 = vector.broadcast %cst_59 : f32 to vector<1x64xf32>
    %138 = arith.mulf %136, %137 : vector<1x64xf32>
    %cst_60 = arith.constant 0.000000e+00 : f32
    %139 = vector.broadcast %cst_60 : f32 to vector<1x64xf32>
    %140 = arith.subf %139, %138 : vector<1x64xf32>
    %141 = math.exp %140 : vector<1x64xf32>
    %cst_61 = arith.constant 1.000000e+00 : f32
    %142 = vector.broadcast %cst_61 : f32 to vector<1x64xf32>
    %143 = arith.addf %142, %141 : vector<1x64xf32>
    %cst_62 = arith.constant 1.000000e+00 : f32
    %144 = vector.broadcast %cst_62 : f32 to vector<1x64xf32>
    %145 = arith.divf %144, %143 : vector<1x64xf32>
    %146 = vector.shape_cast %145 : vector<1x64xf32> to vector<1x64xf32>
    %147 = vector.broadcast %146 : vector<1x64xf32> to vector<4x64xf32>
    %148 = tpu.concatenate %105, %119, %133, %147 in 0 : vector<4x64xf32>, vector<4x64xf32>, vector<4x64xf32>, vector<4x64xf32> -> vector<16x64xf32>
    %149 = arith.mulf %148, %30 : vector<16x64xf32>
    %150 = arith.addf %20, %149 : vector<16x64xf32>
    %cst_63 = arith.constant dense<0.000000e+00> : vector<16x64xf32>
    %151 = tpu.matmul %2, %90, %cst_63 {dimension_numbers = #tpu.dot_dimension_numbers<[1], [0], [0], [1], [0, 0, 1, 1], [], []>} : vector<16x16xf32>, vector<16x64xf32>, vector<16x64xf32> -> vector<16x64xf32>
    %152 = vector.broadcast %3 : vector<16x1xf32> to vector<16x64xf32>
    %153 = arith.addf %151, %152 : vector<16x64xf32>
    %c0_64 = arith.constant 0 : index
    %c0_65 = arith.constant 0 : index
    %c0_66 = arith.constant 0 : index
    %154 = vector.load %arg1[%c0_64, %c0_65, %c0_66] : memref<2x16x64xf32, #tpu.memory_space<vmem>>, vector<1x16x64xf32>
    %155 = vector.shape_cast %154 : vector<1x16x64xf32> to vector<16x64xf32>
    %156 = arith.addf %155, %153 : vector<16x64xf32>
    %cst_67 = arith.constant dense<0.000000e+00> : vector<64xf32>
    %157 = vector.multi_reduction <add>, %156, %cst_67 [0] : vector<16x64xf32> to vector<64xf32>
    %158 = vector.shape_cast %157 : vector<64xf32> to vector<1x64xf32>
    %cst_68 = arith.constant 6.250000e-02 : f32
    %159 = vector.broadcast %cst_68 : f32 to vector<1x64xf32>
    %160 = arith.mulf %158, %159 : vector<1x64xf32>
    %161 = arith.mulf %156, %156 : vector<16x64xf32>
    %cst_69 = arith.constant dense<0.000000e+00> : vector<64xf32>
    %162 = vector.multi_reduction <add>, %161, %cst_69 [0] : vector<16x64xf32> to vector<64xf32>
    %163 = vector.shape_cast %162 : vector<64xf32> to vector<1x64xf32>
    %cst_70 = arith.constant 6.250000e-02 : f32
    %164 = vector.broadcast %cst_70 : f32 to vector<1x64xf32>
    %165 = arith.mulf %163, %164 : vector<1x64xf32>
    %166 = arith.mulf %160, %160 : vector<1x64xf32>
    %167 = arith.subf %165, %166 : vector<1x64xf32>
    %168 = vector.broadcast %160 : vector<1x64xf32> to vector<16x64xf32>
    %169 = arith.subf %156, %168 : vector<16x64xf32>
    %cst_71 = arith.constant 9.99999974E-6 : f32
    %170 = vector.broadcast %cst_71 : f32 to vector<1x64xf32>
    %171 = arith.addf %167, %170 : vector<1x64xf32>
    %172 = math.rsqrt %171 : vector<1x64xf32>
    %173 = vector.broadcast %172 : vector<1x64xf32> to vector<16x64xf32>
    %174 = arith.mulf %169, %173 : vector<16x64xf32>
    %175 = vector.broadcast %9 : vector<16x1xf32> to vector<16x64xf32>
    %176 = arith.mulf %174, %175 : vector<16x64xf32>
    %177 = vector.broadcast %10 : vector<16x1xf32> to vector<16x64xf32>
    %178 = arith.addf %176, %177 : vector<16x64xf32>
    %cst_72 = arith.constant dense<0.000000e+00> : vector<32x64xf32>
    %179 = tpu.matmul %4, %178, %cst_72 {dimension_numbers = #tpu.dot_dimension_numbers<[1], [0], [0], [1], [0, 0, 1, 1], [], []>} : vector<32x16xf32>, vector<16x64xf32>, vector<32x64xf32> -> vector<32x64xf32>
    %180 = vector.broadcast %5 : vector<32x1xf32> to vector<32x64xf32>
    %181 = arith.addf %179, %180 : vector<32x64xf32>
    %cst_73 = arith.constant 0.000000e+00 : f32
    %182 = vector.broadcast %cst_73 : f32 to vector<32x64xf32>
    %183 = arith.maximumf %181, %182 : vector<32x64xf32>
    %cst_74 = arith.constant dense<0.000000e+00> : vector<16x64xf32>
    %184 = tpu.matmul %6, %183, %cst_74 {dimension_numbers = #tpu.dot_dimension_numbers<[1], [0], [0], [1], [0, 0, 1, 1], [], []>} : vector<16x32xf32>, vector<32x64xf32>, vector<16x64xf32> -> vector<16x64xf32>
    %185 = vector.broadcast %7 : vector<16x1xf32> to vector<16x64xf32>
    %186 = arith.addf %184, %185 : vector<16x64xf32>
    %187 = arith.addf %178, %186 : vector<16x64xf32>
    %cst_75 = arith.constant dense<0.000000e+00> : vector<64xf32>
    %188 = vector.multi_reduction <add>, %187, %cst_75 [0] : vector<16x64xf32> to vector<64xf32>
    %189 = vector.shape_cast %188 : vector<64xf32> to vector<1x64xf32>
    %cst_76 = arith.constant 6.250000e-02 : f32
    %190 = vector.broadcast %cst_76 : f32 to vector<1x64xf32>
    %191 = arith.mulf %189, %190 : vector<1x64xf32>
    %192 = arith.mulf %187, %187 : vector<16x64xf32>
    %cst_77 = arith.constant dense<0.000000e+00> : vector<64xf32>
    %193 = vector.multi_reduction <add>, %192, %cst_77 [0] : vector<16x64xf32> to vector<64xf32>
    %194 = vector.shape_cast %193 : vector<64xf32> to vector<1x64xf32>
    %cst_78 = arith.constant 6.250000e-02 : f32
    %195 = vector.broadcast %cst_78 : f32 to vector<1x64xf32>
    %196 = arith.mulf %194, %195 : vector<1x64xf32>
    %197 = arith.mulf %191, %191 : vector<1x64xf32>
    %198 = arith.subf %196, %197 : vector<1x64xf32>
    %199 = vector.broadcast %191 : vector<1x64xf32> to vector<16x64xf32>
    %200 = arith.subf %187, %199 : vector<16x64xf32>
    %cst_79 = arith.constant 9.99999974E-6 : f32
    %201 = vector.broadcast %cst_79 : f32 to vector<1x64xf32>
    %202 = arith.addf %198, %201 : vector<1x64xf32>
    %203 = math.rsqrt %202 : vector<1x64xf32>
    %204 = vector.broadcast %203 : vector<1x64xf32> to vector<16x64xf32>
    %205 = arith.mulf %200, %204 : vector<16x64xf32>
    %206 = vector.broadcast %11 : vector<16x1xf32> to vector<16x64xf32>
    %207 = arith.mulf %205, %206 : vector<16x64xf32>
    %208 = vector.broadcast %12 : vector<16x1xf32> to vector<16x64xf32>
    %209 = arith.addf %207, %208 : vector<16x64xf32>
    %c0_80 = arith.constant 0 : index
    %c0_81 = arith.constant 0 : index
    %c0_82 = arith.constant 0 : index
    %210 = vector.load %arg11[%c0_80, %c0_81, %c0_82] : memref<2x16x64xf32, #tpu.memory_space<vmem>>, vector<1x16x64xf32>
    %211 = vector.shape_cast %210 : vector<1x16x64xf32> to vector<16x64xf32>
    %212 = vector.shape_cast %209 : vector<16x64xf32> to vector<1x16x64xf32>
    tpu.vector_store %arg11[%c0_80, %c0_81, %c0_82], %212 {strides = array<i32>} : memref<2x16x64xf32, #tpu.memory_space<vmem>>, vector<1x16x64xf32>,
    %cst_83 = arith.constant dense<0.000000e+00> : vector<16x64xf32>
    %213 = tpu.matmul %2, %150, %cst_83 {dimension_numbers = #tpu.dot_dimension_numbers<[1], [0], [0], [1], [0, 0, 1, 1], [], []>} : vector<16x16xf32>, vector<16x64xf32>, vector<16x64xf32> -> vector<16x64xf32>
    %214 = vector.broadcast %3 : vector<16x1xf32> to vector<16x64xf32>
    %215 = arith.addf %213, %214 : vector<16x64xf32>
    %c1_84 = arith.constant 1 : index
    %c0_85 = arith.constant 0 : index
    %c0_86 = arith.constant 0 : index
    %216 = vector.load %arg1[%c1_84, %c0_85, %c0_86] : memref<2x16x64xf32, #tpu.memory_space<vmem>>, vector<1x16x64xf32>
    %217 = vector.shape_cast %216 : vector<1x16x64xf32> to vector<16x64xf32>
    %218 = arith.addf %217, %215 : vector<16x64xf32>
    %cst_87 = arith.constant dense<0.000000e+00> : vector<64xf32>
    %219 = vector.multi_reduction <add>, %218, %cst_87 [0] : vector<16x64xf32> to vector<64xf32>
    %220 = vector.shape_cast %219 : vector<64xf32> to vector<1x64xf32>
    %cst_88 = arith.constant 6.250000e-02 : f32
    %221 = vector.broadcast %cst_88 : f32 to vector<1x64xf32>
    %222 = arith.mulf %220, %221 : vector<1x64xf32>
    %223 = arith.mulf %218, %218 : vector<16x64xf32>
    %cst_89 = arith.constant dense<0.000000e+00> : vector<64xf32>
    %224 = vector.multi_reduction <add>, %223, %cst_89 [0] : vector<16x64xf32> to vector<64xf32>
    %225 = vector.shape_cast %224 : vector<64xf32> to vector<1x64xf32>
    %cst_90 = arith.constant 6.250000e-02 : f32
    %226 = vector.broadcast %cst_90 : f32 to vector<1x64xf32>
    %227 = arith.mulf %225, %226 : vector<1x64xf32>
    %228 = arith.mulf %222, %222 : vector<1x64xf32>
    %229 = arith.subf %227, %228 : vector<1x64xf32>
    %230 = vector.broadcast %222 : vector<1x64xf32> to vector<16x64xf32>
    %231 = arith.subf %218, %230 : vector<16x64xf32>
    %cst_91 = arith.constant 9.99999974E-6 : f32
    %232 = vector.broadcast %cst_91 : f32 to vector<1x64xf32>
    %233 = arith.addf %229, %232 : vector<1x64xf32>
    %234 = math.rsqrt %233 : vector<1x64xf32>
    %235 = vector.broadcast %234 : vector<1x64xf32> to vector<16x64xf32>
    %236 = arith.mulf %231, %235 : vector<16x64xf32>
    %237 = vector.broadcast %9 : vector<16x1xf32> to vector<16x64xf32>
    %238 = arith.mulf %236, %237 : vector<16x64xf32>
    %239 = vector.broadcast %10 : vector<16x1xf32> to vector<16x64xf32>
    %240 = arith.addf %238, %239 : vector<16x64xf32>
    %cst_92 = arith.constant dense<0.000000e+00> : vector<32x64xf32>
    %241 = tpu.matmul %4, %240, %cst_92 {dimension_numbers = #tpu.dot_dimension_numbers<[1], [0], [0], [1], [0, 0, 1, 1], [], []>} : vector<32x16xf32>, vector<16x64xf32>, vector<32x64xf32> -> vector<32x64xf32>
    %242 = vector.broadcast %5 : vector<32x1xf32> to vector<32x64xf32>
    %243 = arith.addf %241, %242 : vector<32x64xf32>
    %cst_93 = arith.constant 0.000000e+00 : f32
    %244 = vector.broadcast %cst_93 : f32 to vector<32x64xf32>
    %245 = arith.maximumf %243, %244 : vector<32x64xf32>
    %cst_94 = arith.constant dense<0.000000e+00> : vector<16x64xf32>
    %246 = tpu.matmul %6, %245, %cst_94 {dimension_numbers = #tpu.dot_dimension_numbers<[1], [0], [0], [1], [0, 0, 1, 1], [], []>} : vector<16x32xf32>, vector<32x64xf32>, vector<16x64xf32> -> vector<16x64xf32>
    %247 = vector.broadcast %7 : vector<16x1xf32> to vector<16x64xf32>
    %248 = arith.addf %246, %247 : vector<16x64xf32>
    %249 = arith.addf %240, %248 : vector<16x64xf32>
    %cst_95 = arith.constant dense<0.000000e+00> : vector<64xf32>
    %250 = vector.multi_reduction <add>, %249, %cst_95 [0] : vector<16x64xf32> to vector<64xf32>
    %251 = vector.shape_cast %250 : vector<64xf32> to vector<1x64xf32>
    %cst_96 = arith.constant 6.250000e-02 : f32
    %252 = vector.broadcast %cst_96 : f32 to vector<1x64xf32>
    %253 = arith.mulf %251, %252 : vector<1x64xf32>
    %254 = arith.mulf %249, %249 : vector<16x64xf32>
    %cst_97 = arith.constant dense<0.000000e+00> : vector<64xf32>
    %255 = vector.multi_reduction <add>, %254, %cst_97 [0] : vector<16x64xf32> to vector<64xf32>
    %256 = vector.shape_cast %255 : vector<64xf32> to vector<1x64xf32>
    %cst_98 = arith.constant 6.250000e-02 : f32
    %257 = vector.broadcast %cst_98 : f32 to vector<1x64xf32>
    %258 = arith.mulf %256, %257 : vector<1x64xf32>
    %259 = arith.mulf %253, %253 : vector<1x64xf32>
    %260 = arith.subf %258, %259 : vector<1x64xf32>
    %261 = vector.broadcast %253 : vector<1x64xf32> to vector<16x64xf32>
    %262 = arith.subf %249, %261 : vector<16x64xf32>
    %cst_99 = arith.constant 9.99999974E-6 : f32
    %263 = vector.broadcast %cst_99 : f32 to vector<1x64xf32>
    %264 = arith.addf %260, %263 : vector<1x64xf32>
    %265 = math.rsqrt %264 : vector<1x64xf32>
    %266 = vector.broadcast %265 : vector<1x64xf32> to vector<16x64xf32>
    %267 = arith.mulf %262, %266 : vector<16x64xf32>
    %268 = vector.broadcast %11 : vector<16x1xf32> to vector<16x64xf32>
    %269 = arith.mulf %267, %268 : vector<16x64xf32>
    %270 = vector.broadcast %12 : vector<16x1xf32> to vector<16x64xf32>
    %271 = arith.addf %269, %270 : vector<16x64xf32>
    %c1_100 = arith.constant 1 : index
    %c0_101 = arith.constant 0 : index
    %c0_102 = arith.constant 0 : index
    %272 = vector.load %arg11[%c1_100, %c0_101, %c0_102] : memref<2x16x64xf32, #tpu.memory_space<vmem>>, vector<1x16x64xf32>
    %273 = vector.shape_cast %272 : vector<1x16x64xf32> to vector<16x64xf32>
    %274 = vector.shape_cast %271 : vector<16x64xf32> to vector<1x16x64xf32>
    tpu.vector_store %arg11[%c1_100, %c0_101, %c0_102], %274 {strides = array<i32>} : memref<2x16x64xf32, #tpu.memory_space<vmem>>, vector<1x16x64xf32>,
    return
  }
  func.func @transform_0(%arg0: i32) -> (i32, i32, i32) {
    %c0_i32 = arith.constant 0 : i32
    %c0_i32_0 = arith.constant 0 : i32
    %c0_i32_1 = arith.constant 0 : i32
    return %c0_i32, %c0_i32_0, %arg0 : i32, i32, i32
  }
  func.func @transform_1(%arg0: i32) -> (i32, i32) {
    %c0_i32 = arith.constant 0 : i32
    %c0_i32_0 = arith.constant 0 : i32
    %c0_i32_1 = arith.constant 0 : i32
    return %c0_i32, %c0_i32_0 : i32, i32
  }
  func.func @transform_2(%arg0: i32) -> (i32, i32) {
    %c0_i32 = arith.constant 0 : i32
    %c0_i32_0 = arith.constant 0 : i32
    %c0_i32_1 = arith.constant 0 : i32
    return %c0_i32, %c0_i32_0 : i32, i32
  }
  func.func @transform_3(%arg0: i32) -> (i32, i32) {
    %c0_i32 = arith.constant 0 : i32
    %c0_i32_0 = arith.constant 0 : i32
    %c0_i32_1 = arith.constant 0 : i32
    return %c0_i32, %c0_i32_0 : i32, i32
  }
  func.func @transform_4(%arg0: i32) -> (i32, i32) {
    %c0_i32 = arith.constant 0 : i32
    %c0_i32_0 = arith.constant 0 : i32
    %c0_i32_1 = arith.constant 0 : i32
    return %c0_i32, %c0_i32_0 : i32, i32
  }
  func.func @transform_5(%arg0: i32) -> (i32, i32) {
    %c0_i32 = arith.constant 0 : i32
    %c0_i32_0 = arith.constant 0 : i32
    %c0_i32_1 = arith.constant 0 : i32
    return %c0_i32, %c0_i32_0 : i32, i32
  }
  func.func @transform_6(%arg0: i32) -> (i32, i32) {
    %c0_i32 = arith.constant 0 : i32
    %c0_i32_0 = arith.constant 0 : i32
    %c0_i32_1 = arith.constant 0 : i32
    return %c0_i32, %c0_i32_0 : i32, i32
  }
  func.func @transform_7(%arg0: i32) -> (i32, i32) {
    %c0_i32 = arith.constant 0 : i32
    %c0_i32_0 = arith.constant 0 : i32
    %c0_i32_1 = arith.constant 0 : i32
    return %c0_i32, %c0_i32_0 : i32, i32
  }
  func.func @transform_8(%arg0: i32) -> (i32, i32) {
    %c0_i32 = arith.constant 0 : i32
    %c0_i32_0 = arith.constant 0 : i32
    %c0_i32_1 = arith.constant 0 : i32
    return %c0_i32, %c0_i32_0 : i32, i32
  }
  func.func @transform_9(%arg0: i32) -> (i32, i32) {
    %c0_i32 = arith.constant 0 : i32
    %c0_i32_0 = arith.constant 0 : i32
    %c0_i32_1 = arith.constant 0 : i32
    return %c0_i32, %c0_i32_0 : i32, i32
  }
  func.func @transform_10(%arg0: i32) -> (i32, i32, i32) {
    %c0_i32 = arith.constant 0 : i32
    %c0_i32_0 = arith.constant 0 : i32
    %c0_i32_1 = arith.constant 0 : i32
    return %c0_i32, %c0_i32_0, %arg0 : i32, i32, i32
  }
}

</mosaic_0001>

<bundles_post_ra>
// kernel: tpu_custom_call.1
= control target key start
LH: loop header
LB: loop body
LE: loop exit
PB: predicated region body
PF: predicated region fallthrough
CT: control target
= control target key end

     0   :  { %v1024_v3 = vmov 0   ;;  %vm1684_vm0 = vcmask 130048   ;;  %s1673_s0 = inlined_call_operand.vmem [shape: f32[2,16,64], index: 0, kind: input, shape index: {}]   ;;  %s1674_s1 = inlined_call_operand.vmem [shape: f32[48,16], index: 1, kind: input, shape index: {}]   ;;  %s1675_s2 = inlined_call_operand.vmem [shape: f32[48,1], index: 2, kind: input, shape index: {}]   ;;  %s1676_s3 = inlined_call_operand.vmem [shape: f32[16,16], index: 3, kind: input, shape index: {}]   ;;  %s1677_s4 = inlined_call_operand.vmem [shape: f32[16,1], index: 4, kind: input, shape index: {}]   ;;  %s1678_s5 = inlined_call_operand.vmem [shape: f32[32,16], index: 5, kind: input, shape index: {}]   ;;  %s1679_s6 = inlined_call_operand.vmem [shape: f32[32,1], index: 6, kind: input, shape index: {}]   ;;  %s1680_s7 = inlined_call_operand.vmem [shape: f32[16,32], index: 7, kind: input, shape index: {}]   ;;  %s1681_s8 = inlined_call_operand.vmem [shape: f32[16,1], index: 8, kind: input, shape index: {}]   ;;  %s1682_s9 = inlined_call_operand.vmem [shape: f32[16,4], index: 9, kind: input, shape index: {}]   ;;  %s1683_s10 = inlined_call_operand.hbm [shape: f32[2,16,64], index: 10, kind: output, shape index: {}]  }
   0x1   :  { %v1089_v0 = vld [vmem:[%s1673_s0 + $0x8] sm:$0xff]  ;;  %v45_v1 = vld [vmem:[%s1675_s2 + $0x18] sm:$0xff]  ;;  %v1097_v2 = vld [vmem:[%s1673_s0] sm:$0xff]  ;;  %946 = vset.pattern.permute.xlu0 %v1024_v3  ;;  %947 = vset.pattern.permute.xlu1 %v1024_v3 }
   0x2   :  { %935 = vmatpush.msra.mxu1 %v1089_v0  ;;  %v41_v4 = vld [vmem:[%s1674_s1 + $0x28] sm:$0xff]  ;;  %85 = vperm.xlu0 %946, %v45_v1   ;;  %v36_v5 = vld [vmem:[%s1674_s1] sm:$0xff]  ;;  %v1111_v6 = vld [vmem:[%s1673_s0 + $0x18] sm:$0xff] }
   0x3   :  { %131 = vmatpush.msra.mxu0 %v1089_v0  ;;  %v44_v7 = vld [vmem:[%s1675_s2 + $0x10] sm:$0xff]  ;;  %v47_v9 = vld [vmem:[%s1675_s2 + $0x28] sm:$0xff]  ;;  %948 = vset.pattern.permute.xlu2 %v1024_v3 }
   0x4   :  { %936 = vmatpush.msra.mxu1 %v1097_v2  ;;  %v1123_v8 = vld [vmem:[%s1673_s0 + $0x10] sm:$0xff]  ;;  %80 = vperm.xlu1 %947, %v44_v7  }
   0x5   :  { %908 = vmatmul.msk.f32.vlgmr.msra.gmra.mxu1 %vm1684_vm0, %v41_v4  ;;  %132 = vmatpush.msra.mxu0 %v1097_v2 }
   0x6   :  { %903 = vmatmul.msk.f32.vlgmr.msra.gmra.mxu0 %vm1684_vm0, %v36_v5  ;;  %169 = vmatpush.msrb.mxu1 %v1111_v6 }
   0x7   :  { %15 = vsyncpa [#allocation3], 0  ;;  %v43_v10 = vld [vmem:[%s1675_s2 + $0x8] sm:$0xff]  ;;  %95 = vperm.xlu2 %948, %v47_v9   ;;  %v42_v12 = vld [vmem:[%s1675_s2] sm:$0xff]  ;;  %vm196_vm1 = vcmask 519168   ;;  %s1029_s12 = smov 128  }
   0x8   :  { %170 = vmatpush.msrb.mxu1 %v1123_v8  ;;  %v37_v11 = vld [vmem:[%s1674_s1 + $0x8] sm:$0xff]  ;;  %v50_v13 = vld [vmem:[%s1677_s4] sm:$0xff]  ;;  %v38_v14 = vld [vmem:[%s1674_s1 + $0x10] sm:$0xff] }
   0x9   :  { %v51_v15 = vld [vmem:[%s1677_s4 + $0x8] sm:$0xff]  ;;  %v46_v16 = vld [vmem:[%s1675_s2 + $0x20] sm:$0xff]  ;;  %v39_v18 = vld [vmem:[%s1674_s1 + $0x18] sm:$0xff] }
   0xa   :  { %75 = vperm.xlu0 %946, %v43_v10   ;;  %v1160_v17 = vld [vmem:[%s1682_s9] sm:$0xff]  ;;  %v1169_v19 = vld [vmem:[%s1682_s9 + $0x8] sm:$0xff]  ;;  %v59_v20 = vld [vmem:[%s1679_s6 + $0x18] sm:$0xff]  ;;  %s891_s9 = sshll.u32 %s1683_s10, 4  ;;  %s892_s9 = int_to_ptr.hbm [resolvable:$true] %s891_s9 }
   0xb   :  { %v40_v21 = vld [vmem:[%s1674_s1 + $0x20] sm:$0xff]  ;;  %s1030_s1 = smov 8  }
   0xc   :  { %70 = vperm.xlu1 %947, %v42_v12   ;;  %v56_v22 = vld [vmem:[%s1679_s6] sm:$0xff] }
   0xd   :  { %911 = vmatmul.msk.f32.vlgmr.msrb.gmra.mxu1 %vm1684_vm0, %v36_v5 }
   0xe   :  { %904 = vmatmul.msk.f32.gmra.mxu0 %vm1684_vm0, %v37_v11 }
   0xf   :  { %90 = vperm.xlu2 %948, %v46_v16  }
  0x12   :  { %442 = vperm.xlu0 %946, %v50_v13  }
  0x14   :  { %447 = vperm.xlu1 %947, %v51_v15  }
  0x15   :  { %912 = vmatmul.msk.f32.gmra.mxu1 %vm1684_vm0, %v37_v11 }
  0x16   :  { %905 = vmatmul.msk.f32.gmra.mxu0 %vm1684_vm0, %v38_v14 }
  0x17   :  { %528 = vperm.xlu2 %948, %v1169_v19  }
  0x1a   :  { %523 = vperm.xlu0 %946, %v1160_v17  }
  0x1d   :  { %913 = vmatmul.msk.f32.gmra.mxu1 %vm1684_vm0, %v38_v14 }
  0x1e   :  { %906 = vmatmul.msk.f32.gmra.mxu0 %vm1684_vm0, %v39_v18 }
  0x22   :  { %560 = vperm.xlu0 %946, %v59_v20  }
  0x25   :  { %914 = vmatmul.msk.f32.gmra.mxu1 %vm1684_vm0, %v39_v18 }
  0x26   :  { %907 = vmatmul.msk.f32.gmra.mxu0 %vm1684_vm0, %v40_v21 }
  0x2a   :  { %545 = vperm.xlu0 %946, %v56_v22  }
  0x2d   :  { %915 = vmatmul.msk.f32.gmra.mxu1 %vm1684_vm0, %v40_v21 }
  0x35   :  { %916 = vmatmul.msk.f32.gmra.mxu1 %vm1684_vm0, %v41_v4 }
  0x74   :  { %v86_v26 = vpop.permute.xlu0 %85 }
  0x76   :  { %v81_v23 = vpop.permute.xlu1 %80 }
  0x7c   :  { %v76_v31 = vpop.permute.xlu0 %75 }
  0x7e   :  { %v71_v27 = vpop.permute.xlu1 %70 }
  0x82   :  { %v1187_v24 = vpop.f32.mrf.mxu1 }
  0x83   :  { %v134_v25 = vpop.f32.mrf.mxu0 }
  0x84   :  { %v135_v38 = vadd.f32 %v134_v25, %v71_v27 }
  0x8a   :  { %v172_v28 = vpop.f32.mrf.mxu1 }
  0x8b   :  { %v173_v29 = vadd.f32 %v172_v28, %v71_v27  ;;  %v137_v30 = vpop.f32.mrf.mxu0 }
  0x8c   :  { %v138_v58 = vadd.f32 %v137_v30, %v76_v31 }
  0x92   :  { %v175_v32 = vpop.f32.mrf.mxu1 }
  0x93   :  { %v176_v33 = vadd.f32 %v175_v32, %v76_v31  ;;  %v140_v34 = vpop.f32.mrf.mxu0 }
  0x94   :  { %v141_v35 = vadd.f32 %v140_v34, %v81_v23 }
  0x9a   :  { %v178_v36 = vpop.f32.mrf.mxu1 }
  0x9b   :  { %v179_v37 = vadd.f32 %v178_v36, %v81_v23  ;;  %v143_v42 = vpop.f32.mrf.mxu0 }
  0x9c   :  { %v144_v52 = vadd.f32 %v143_v42, %v86_v26 }
  0x9d   :  { %v190_v39 = vsub.f32 %v179_v37, %v141_v35 }
  0x9f   :  { %v194_v40 = vmul.f32 %v190_v39, %v135_v38  ;;  %v318_v41 = vmul.f32 %v190_v39, %v173_v29 }
  0xa1   :  { %v197_v43 = vsel %vm196_vm1, %v194_v40, 0.0  ;;  %v225_v44 = vrot.slane %v194_v40, 4  ;;  %v320_v45 = vsel %vm196_vm1, %v318_v41, 0.0  ;;  %v348_v46 = vrot.slane %v318_v41, 4 }
  0xa2   :  { %v198_v47 = vrot.slane %v197_v43, 4  ;;  %v321_v48 = vrot.slane %v320_v45, 4  ;;  %v181_v49 = vpop.f32.mrf.mxu1 }
  0xa3   :  { %v227_v50 = vsel %vm196_vm1, %v225_v44, 0.0  ;;  %v350_v51 = vsel %vm196_vm1, %v348_v46, 0.0  ;;  %v182_v53 = vadd.f32 %v181_v49, %v86_v26 }
  0xa4   :  { %v199_v54 = vadd.f32 %v198_v47, %v197_v43  ;;  %v228_v55 = vrot.slane %v227_v50, 4  ;;  %v322_v56 = vadd.f32 %v321_v48, %v320_v45  ;;  %v351_v57 = vrot.slane %v350_v51, 4 }
  0xa5   :  { %v191_v59 = vsub.f32 %v182_v53, %v144_v52 }
  0xa6   :  { %v200_v60 = vrot.slane %v199_v54, 2  ;;  %v229_v61 = vadd.f32 %v228_v55, %v227_v50  ;;  %v323_v62 = vrot.slane %v322_v56, 2  ;;  %v352_v63 = vadd.f32 %v351_v57, %v350_v51 }
  0xa7   :  { %v195_v1 = vmul.f32 %v191_v59, %v138_v58  ;;  %v319_v4 = vmul.f32 %v191_v59, %v176_v33 }
  0xa8   :  { %v201_v5 = vadd.f32 %v200_v60, %v199_v54  ;;  %v230_v7 = vrot.slane %v229_v61, 2  ;;  %v324_v9 = vadd.f32 %v323_v62, %v322_v56  ;;  %v353_v10 = vrot.slane %v352_v63, 2 }
  0xa9   :  { %v254_v11 = vsel %vm196_vm1, %v195_v1, 0.0  ;;  %v282_v12 = vrot.slane %v195_v1, 4  ;;  %v377_v13 = vsel %vm196_vm1, %v319_v4, 0.0  ;;  %v405_v14 = vrot.slane %v319_v4, 4 }
  0xaa   :  { %v202_v15 = vrot.slane %v201_v5, 1  ;;  %v231_v16 = vadd.f32 %v230_v7, %v229_v61  ;;  %v325_v18 = vrot.slane %v324_v9, 1  ;;  %v354_v20 = vadd.f32 %v353_v10, %v352_v63  ;;  %v184_v63 = vpop.f32.mrf.mxu1  ;;  %v96_v10 = vpop.permute.xlu2 %95 }
  0xab   :  { %v255_v21 = vrot.slane %v254_v11, 4  ;;  %v284_v22 = vsel %vm196_vm1, %v282_v12, 0.0  ;;  %v378_v23 = vrot.slane %v377_v13, 4  ;;  %v407_v25 = vsel %vm196_vm1, %v405_v14, 0.0 }
  0xac   :  { %v203_v26 = vadd.f32 %v202_v15, %v201_v5  ;;  %v232_v27 = vrot.slane %v231_v16, 1  ;;  %v326_v28 = vadd.f32 %v325_v18, %v324_v9  ;;  %v355_v29 = vrot.slane %v354_v20, 1 }
  0xad   :  { %v256_v30 = vadd.f32 %v255_v21, %v254_v11  ;;  %v285_v31 = vrot.slane %v284_v22, 4  ;;  %v379_v32 = vadd.f32 %v378_v23, %v377_v13  ;;  %v408_v33 = vrot.slane %v407_v25, 4 }
  0xae   :  { %v204_v34 = vmul.f32 0.5, %v203_v26  ;;  %v233_v35 = vadd.f32 %v232_v27, %v231_v16  ;;  %v327_v36 = vmul.f32 0.5, %v326_v28  ;;  %v356_v37 = vadd.f32 %v355_v29, %v354_v20 }
  0xaf   :  { %v257_v38 = vrot.slane %v256_v30, 2  ;;  %v286_v39 = vadd.f32 %v285_v31, %v284_v22  ;;  %v380_v40 = vrot.slane %v379_v32, 2  ;;  %v409_v41 = vadd.f32 %v408_v33, %v407_v25 }
  0xb0   :  { %v205_v42 = vsub.f32 0.0, %v204_v34  ;;  %v234_v43 = vmul.f32 0.5, %v233_v35  ;;  %v328_v44 = vsub.f32 0.0, %v327_v36  ;;  %v357_v45 = vmul.f32 0.5, %v356_v37 }
  0xb1   :  { %v258_v46 = vadd.f32 %v257_v38, %v256_v30  ;;  %v287_v47 = vrot.slane %v286_v39, 2  ;;  %v381_v48 = vadd.f32 %v380_v40, %v379_v32  ;;  %v410_v49 = vrot.slane %v409_v41, 2  ;;  %v146_v32 = vpop.f32.mrf.mxu0 }
  0xb2   :  { %v206_v50 = vmul.f32 1.442695, %v205_v42  ;;  %v235_v51 = vsub.f32 0.0, %v234_v43  ;;  %v329_v52 = vmul.f32 1.442695, %v328_v44  ;;  %v358_v53 = vsub.f32 0.0, %v357_v45  ;;  %v187_v31 = vpop.f32.mrf.mxu1  ;;  %v91_v34 = vpop.permute.xlu2 %90 }
  0xb3   :  { %v259_v54 = vrot.slane %v258_v46, 1  ;;  %v288_v55 = vadd.f32 %v287_v47, %v286_v39  ;;  %v382_v56 = vrot.slane %v381_v48, 1  ;;  %v411_v57 = vadd.f32 %v410_v49, %v409_v41 }
  0xb4   :  { %958 = vpow2.f32 %v206_v50  ;;  %v236_v58 = vmul.f32 1.442695, %v235_v51  ;;  %v359_v59 = vmul.f32 1.442695, %v358_v53  ;;  %v188_v35 = vadd.f32 %v187_v31, %v96_v10 }
  0xb5   :  { %960 = vpow2.f32 %v329_v52  ;;  %v260_v60 = vadd.f32 %v259_v54, %v258_v46  ;;  %v289_v61 = vrot.slane %v288_v55, 1  ;;  %v383_v62 = vadd.f32 %v382_v56, %v381_v48 }
  0xb6   :  { %962 = vpow2.f32 %v236_v58  ;;  %v412_v1 = vrot.slane %v411_v57, 1  ;;  %v185_v36 = vadd.f32 %v184_v63, %v91_v34  ;;  %v1209_v37 = vadd.f32 %v146_v32, %v91_v34 }
  0xb7   :  { %964 = vpow2.f32 %v359_v59  ;;  %v261_v4 = vmul.f32 0.5, %v260_v60  ;;  %v290_v5 = vadd.f32 %v289_v61, %v288_v55  ;;  %v384_v7 = vmul.f32 0.5, %v383_v62 }
  0xb8   :  { %v413_v9 = vadd.f32 %v412_v1, %v411_v57  ;;  %v1217_v41 = vadd.f32 %v1187_v24, %v96_v10  ;;  %v1230_v47 = vsub.f32 %v185_v36, %v1209_v37 }
  0xb9   :  { %v262_v11 = vsub.f32 0.0, %v261_v4  ;;  %v291_v12 = vmul.f32 0.5, %v290_v5  ;;  %v385_v20 = vsub.f32 0.0, %v384_v7 }
  0xba   :  { %v959_v13 = vpop.eup %958  ;;  %v414_v14 = vmul.f32 0.5, %v413_v9  ;;  %v1227_v46 = vsub.f32 %v188_v35, %v1217_v41 }
  0xbb   :  { %v961_v15 = vpop.eup %960  ;;  %v1197_v16 = vadd.f32 1.0, %v959_v13  ;;  %v292_v18 = vsub.f32 0.0, %v291_v12  ;;  %v263_v27 = vmul.f32 1.442695, %v262_v11  ;;  %v386_v30 = vmul.f32 1.442695, %v385_v20 }
  0xbc   :  { %v963_v21 = vpop.eup %962  ;;  %v1199_v22 = vadd.f32 1.0, %v961_v15  ;;  %v415_v23 = vsub.f32 0.0, %v414_v14 }
  0xbd   :  { %v965_v25 = vpop.eup %964  ;;  %966 = vrcp.f32 %v1197_v16  ;;  %v1202_v26 = vadd.f32 1.0, %v963_v21  ;;  %v293_v29 = vmul.f32 1.442695, %v292_v18  ;;  %v220_v39 = vand.u32 2147483648, %v1197_v16 }
  0xbe   :  { %968 = vrcp.f32 %v1199_v22  ;;  %v1205_v28 = vadd.f32 1.0, %v965_v25  ;;  %v416_v33 = vmul.f32 1.442695, %v415_v23  ;;  %v343_v48 = vand.u32 2147483648, %v1199_v22 }
  0xbf   :  { %970 = vrcp.f32 %v1202_v26  ;;  %v250_v44 = vand.u32 2147483648, %v1202_v26  ;;  %v218_v49 = vand.u32 2147483647, %v1197_v16  ;;  %v1234_v50 = vor.u32 1.1754944e-38, %v220_v39 }
  0xc0   :  { %972 = vrcp.f32 %v1205_v28  ;;  %v248_v51 = vand.u32 2147483647, %v1202_v26  ;;  %v341_v56 = vand.u32 2147483647, %v1199_v22  ;;  %v373_v57 = vand.u32 2147483648, %v1205_v28 }
  0xc1   :  { %974 = vpow2.f32 %v263_v27  ;;  %v1247_v61 = vor.u32 1.1754944e-38, %v250_v44  ;;  %v371_v62 = vand.u32 2147483647, %v1205_v28  ;;  %vm244_vm3 = vweird.f32 %v1202_v26 }
  0xc2   :  { %976 = vpow2.f32 %v293_v29  ;;  %v1255_v4 = vor.u32 1.1754944e-38, %v343_v48  ;;  %vm214_vm4 = vweird.f32 %v1197_v16  ;;  %v1267_v11 = vor.u32 1.1754944e-38, %v373_v57 }
  0xc3   :  { %v1211_v38 = vpop.eup %966  ;;  %978 = vpow2.f32 %v386_v30  ;;  %vm1273_vm6 = vcmp.eq.f32.partialorder %v248_v51, 8.507059e+37  ;;  %vm337_vm7 = vweird.f32 %v1199_v22  ;;  %vm1285_vm13 = vcmp.eq.f32.partialorder %v218_v49, 8.507059e+37 }
  0xc4   :  { %v1214_v40 = vpop.eup %968  ;;  %980 = vpow2.f32 %v416_v33  ;;  %v210_v43 = vmul.f32 %v1211_v38, %v1197_v16  ;;  %vm215_vm2 = vweird.f32 %v1211_v38  ;;  %vm1307_vm1 = vcmp.eq.f32.partialorder %v341_v56, 8.507059e+37 }
  0xc5   :  { %v1219_v42 = vpop.eup %970  ;;  %v333_v52 = vmul.f32 %v1214_v40, %v1199_v22  ;;  %vm338_vm5 = vweird.f32 %v1214_v40  ;;  %vm1340_vm14 = vcmp.eq.f32.partialorder %v371_v62, 8.507059e+37 }
  0xc6   :  { %v1224_v45 = vpop.eup %972  ;;  %v240_v55 = vmul.f32 %v1219_v42, %v1202_v26  ;;  %v211_v60 = vsub.f32 1.0, %v210_v43  ;;  %vm245_vm9 = vweird.f32 %v1219_v42  ;;  %v1025_v43 = vmov 1  }
  0xc7   :  { %v975_v24 = vpop.eup %974  ;;  %v334_v7 = vsub.f32 1.0, %v333_v52  ;;  %v1263_v9 = vmul.f32 %v1224_v45, %v1205_v28  ;;  %vm368_vm11 = vweird.f32 %v1224_v45  ;;  %949 = vset.pattern.permute.xlu1 %v1025_v43  ;;  %950 = vset.pattern.permute.xlu2 %v1025_v43  ;;  %vm1333_vm8 = vmor %vm244_vm3, %vm245_vm9 }
  0xc8   :  { %v977_v53 = vpop.eup %976  ;;  %v1239_v54 = vadd.f32 1.0, %v975_v24  ;;  %v241_v10 = vsub.f32 1.0, %v240_v55  ;;  %v212_v14 = vmul.f32 %v1211_v38, %v211_v60  ;;  %538 = vperm.xlu1 %949, %v1169_v19   ;;  %534 = vperm.xlu2 %950, %v1160_v17   ;;  %vm1357_vm3 = vmor %vm214_vm4, %vm215_vm2  ;;  %vm1705_vm4 = vweird.f32 %v1205_v28 }
  0xc9   :  { %v979_v58 = vpop.eup %978  ;;  %v1245_v59 = vadd.f32 1.0, %v977_v53  ;;  %v335_v25 = vmul.f32 %v1214_v40, %v334_v7  ;;  %v364_v27 = vsub.f32 1.0, %v1263_v9  ;;  %vm1378_vm2 = vmor %vm337_vm7, %vm338_vm5 }
  0xca   :  { %v981_v63 = vpop.eup %980  ;;  %982 = vrcp.f32 %v1239_v54  ;;  %v1251_v1 = vadd.f32 1.0, %v979_v58  ;;  %v277_v13 = vand.u32 2147483648, %v1239_v54  ;;  %v275_v20 = vand.u32 2147483647, %v1239_v54 }
  0xcb   :  { %984 = vrcp.f32 %v1245_v59  ;;  %v1258_v5 = vadd.f32 1.0, %v981_v63  ;;  %v307_v31 = vand.u32 2147483648, %v1245_v59  ;;  %v242_v32 = vmul.f32 %v1219_v42, %v241_v10 }
  0xcc   :  { %986 = vrcp.f32 %v1251_v1  ;;  %v400_v12 = vand.u32 2147483648, %v1251_v1  ;;  %v398_v21 = vand.u32 2147483647, %v1251_v1  ;;  %v1304_v36 = vor.u32 1.1754944e-38, %v277_v13 }
  0xcd   :  { %988 = vrcp.f32 %v1258_v5  ;;  %v430_v18 = vand.u32 2147483648, %v1258_v5  ;;  %v428_v30 = vand.u32 2147483647, %v1258_v5  ;;  %v213_v39 = vadd.f32 %v1211_v38, %v212_v14 }
  0xce   :  { %v1300_v34 = vor.u32 1.1754944e-38, %v400_v12  ;;  %vm1316_vm15 = vcmp.eq.f32.partialorder %v275_v20, 8.507059e+37  ;;  %v305_v52 = vand.u32 2147483647, %v1245_v59  ;;  %v243_v53 = vadd.f32 %v1219_v42, %v242_v32 }
  0xcf   :  { %v1314_v24 = vor.u32 1.1754944e-38, %v430_v18  ;;  %v336_v60 = vadd.f32 %v1214_v40, %v335_v25  ;;  %vm1344_vm12 = vcmp.eq.f32.partialorder %v398_v21, 8.507059e+37  ;;  %vm1349_vm0 = vcmp.eq.f32.partialorder %v428_v30, 8.507059e+37 }
  0xd0   :  { %v1291_v29 = vpop.eup %982  ;;  %v308_v12 = vor.u32 1.1754944e-38, %v307_v31  ;;  %v247_v13 = vsel %vm1333_vm8, %v1219_v42, %v243_v53  ;;  %v217_v20 = vsel %vm1357_vm3, %v1211_v38, %v213_v39  ;;  %v365_v32 = vmul.f32 %v1224_v45, %v364_v27  ;;  %951 = vset.pattern.permute.xlu1 %v1024_v3  ;;  %952 = vset.pattern.permute.xlu2 %v1024_v3 }
  0xd1   :  { %v1297_v33 = vpop.eup %984  ;;  %v267_v35 = vmul.f32 %v1291_v29, %v1239_v54  ;;  %v252_v25 = vsel %vm1273_vm6, %v1247_v61, %v247_v13  ;;  %v340_v31 = vsel %vm1378_vm2, %v1214_v40, %v336_v60  ;;  %vm1392_vm6 = vmor %vm1705_vm4, %vm368_vm11  ;;  %vm1708_vm7 = vweird.f32 %v1291_v29  ;;  %v1486_v60 = vpop.permute.xlu1 %447 }
  0xd2   :  { %v1311_v48 = vpop.eup %986  ;;  %v297_v51 = vmul.f32 %v1297_v33, %v1245_v59  ;;  %vm302_vm9 = vweird.f32 %v1297_v33  ;;  %vm1709_vm8 = vweird.f32 %v1239_v54  ;;  %v222_v28 = vsel %vm1285_vm13, %v1234_v50, %v217_v20 }
  0xd3   :  { %v989_v55 = vpop.eup %988  ;;  %v390_v56 = vmul.f32 %v1311_v48, %v1251_v1  ;;  %v268_v57 = vsub.f32 1.0, %v267_v35  ;;  %vm395_vm10 = vweird.f32 %v1311_v48  ;;  %vm1400_vm3 = vmor %vm1709_vm8, %vm1708_vm7  ;;  %vm1712_vm11 = vweird.f32 %v1245_v59 }
  0xd4   :  { %v420_v9 = vmul.f32 %v989_v55, %v1258_v5  ;;  %v298_v10 = vsub.f32 1.0, %v297_v51  ;;  %vm425_vm5 = vweird.f32 %v989_v55  ;;  %vm303_vm2 = vmor %vm1712_vm11, %vm302_vm9  ;;  %vm1713_vm4 = vcmask 1043456  }
  0xd5   :  { %v391_v14 = vsub.f32 1.0, %v390_v56  ;;  %v269_v18 = vmul.f32 %v1291_v29, %v268_v57  ;;  %v312_v54 = vsel %vm1713_vm4, %v222_v28, %v252_v25  ;;  %v366_v39 = vadd.f32 %v1224_v45, %v365_v32  ;;  %v1471_v57 = vld [vmem:[%s1676_s3] sm:$0xff] }
  0xd6   :  { %v421_v16 = vsub.f32 1.0, %v420_v9  ;;  %v299_v21 = vmul.f32 %v1297_v33, %v298_v10  ;;  %vm1714_vm7 = vweird.f32 %v1251_v1  ;;  %vm306_vm8 = vcmp.eq.f32.partialorder %v305_v52, 8.507059e+37 }
  0xd7   :  { %v392_v30 = vmul.f32 %v1311_v48, %v391_v14  ;;  %v270_v38 = vadd.f32 %v1291_v29, %v269_v18  ;;  %vm1422_vm13 = vmor %vm1714_vm7, %vm395_vm10  ;;  %v345_v59 = vsel %vm1307_vm1, %v1255_v4, %v340_v31  ;;  %vm1717_vm10 = vweird.f32 %v1258_v5 }
  0xd8   :  { %v422_v61 = vmul.f32 %v989_v55, %v421_v16  ;;  %v300_v40 = vadd.f32 %v1297_v33, %v299_v21  ;;  %vm426_vm9 = vmor %vm1717_vm10, %vm425_vm5  ;;  %v370_v3 = vsel %vm1392_vm6, %v1224_v45, %v366_v39  ;;  %v314_v44 = vmul.f32 %v312_v54, %v1230_v47 }
  0xd9   :  { %v393_v27 = vadd.f32 %v1311_v48, %v392_v30  ;;  %v274_v35 = vsel %vm1400_vm3, %v1291_v29, %v270_v38  ;;  %vm1718_vm3 = vmmov %vm1713_vm4 }
  0xda   :  { %v423_v23 = vadd.f32 %v989_v55, %v422_v61  ;;  %v304_v29 = vsel %vm303_vm2, %v1297_v33, %v300_v40  ;;  %v279_v33 = vsel %vm1316_vm15, %v1304_v36, %v274_v35  ;;  %vm1719_vm15 = vmmov %vm1718_vm3 }
  0xdb   :  { %v397_v1 = vsel %vm1422_vm13, %v1311_v48, %v393_v27  ;;  %v309_v43 = vsel %vm306_vm8, %v308_v12, %v304_v29  ;;  %v375_v48 = vsel %vm1340_vm14, %v1267_v11, %v370_v3  ;;  %vm1720_vm1 = vmmov %vm1718_vm3  ;;  %vm481_vm14 = vcmask 523264   ;;  %v58_v29 = vld [vmem:[%s1679_s6 + $0x10] sm:$0xff] }
  0xdc   :  { %v427_v51 = vsel %vm426_vm9, %v989_v55, %v423_v23  ;;  %v313_v4 = vsel %vm1718_vm3, %v279_v33, %v309_v43  ;;  %v402_v5 = vsel %vm1344_vm12, %v1300_v34, %v397_v1  ;;  %v434_v45 = vsel %vm1719_vm15, %v345_v59, %v375_v48  ;;  %v57_v59 = vld [vmem:[%s1679_s6 + $0x8] sm:$0xff]  ;;  %555 = vperm.xlu1 %951, %v58_v29   ;;  %v1500_v1 = vpop.permute.xlu2 %528 }
  0xdd   :  { %v432_v36 = vsel %vm1349_vm0, %v1314_v24, %v427_v51  ;;  %v315_v49 = vmul.f32 %v313_v4, %v1227_v46  ;;  %v436_v53 = vmul.f32 %v434_v45, %v1230_v47  ;;  %v316_v24 = vadd.f32 %v314_v44, %v1209_v37  ;;  %v1482_v47 = vpop.permute.xlu0 %442  ;;  %550 = vperm.xlu2 %952, %v57_v59   ;;  %v62_v44 = vld [vmem:[%s1681_s8] sm:$0xff]  ;;  %v63_v48 = vld [vmem:[%s1681_s8 + $0x8] sm:$0xff] }
  0xde   :  { %v435_v52 = vsel %vm1720_vm1, %v402_v5, %v432_v36  ;;  %vm1721_vm0 = vcmask 130048   ;;  %vm618_vm8 = vcmask 261120  }
  0xdf   :  { %v437_v55 = vmul.f32 %v435_v52, %v1227_v46  ;;  %v317_v11 = vadd.f32 %v315_v49, %v1217_v41  ;;  %v1462_v56 = vadd.f32 %v436_v53, %v1209_v37  ;;  %v1478_v46 = vld [vmem:[%s1676_s3 + $0x8] sm:$0xff]  ;;  %vm1722_vm12 = vmmov %vm1721_vm0 }
  0xe0   :  { %vm1723_vm2 = vmmov %vm1721_vm0 }
  0xe1   :  { %v1465_v34 = vadd.f32 %v437_v55, %v1217_v41  ;;  %470 = vmatpush.msra.mxu2 %v317_v11  ;;  %vm1724_vm4 = vmmov %vm1721_vm0 }
  0xe2   :  { %vm1725_vm7 = vmmov %vm1721_vm0 }
  0xe3   :  { %471 = vmatpush.msra.mxu2 %v316_v24  ;;  %vm1726_vm13 = vmmov %vm1721_vm0 }
  0xe4   :  { %917 = vmatmul.msk.f32.vlgmr.msra.gmra.mxu2 %vm1721_vm0, %v1471_v57  ;;  %610 = vperm.xlu1 %951, %v62_v44   ;;  %vm1727_vm10 = vmmov %vm1721_vm0 }
  0xe5   :  { %v1508_v49 = vpop.permute.xlu0 %523  ;;  %615 = vperm.xlu2 %952, %v63_v48   ;;  %vm1728_vm9 = vmmov %vm1721_vm0 }
  0xec   :  { %918 = vmatmul.msk.f32.gmra.mxu2 %vm1722_vm12, %v1478_v46 }
 0x122   :  { %v1514_v55 = vpop.permute.xlu2 %534 }
 0x13a   :  { %v1510_v45 = vpop.permute.xlu1 %538 }
 0x167   :  { %v473_v41 = vpop.f32.mrf.mxu2 }
 0x168   :  { %v474_v37 = vadd.f32 %v473_v41, %v1482_v47  ;;  %v1521_v41 = vld [vmem:[%s1678_s5] sm:$0xff] }
 0x16a   :  { %v479_v58 = vadd.f32 %v474_v37, %v1097_v2  ;;  %v1526_v37 = vld [vmem:[%s1678_s5 + $0x8] sm:$0xff] }
 0x16c   :  { %v492_v9 = vmul.f32 %v479_v58, %v479_v58  ;;  %v482_v10 = vsel %vm481_vm14, %v479_v58, 0.0 }
 0x16e   :  { %v494_v14 = vsel %vm481_vm14, %v492_v9, 0.0 }
 0x16f   :  { %v476_v63 = vpop.f32.mrf.mxu2 }
 0x170   :  { %v477_v7 = vadd.f32 %v476_v63, %v1486_v60  ;;  %v1542_v63 = vld [vmem:[%s1678_s5 + $0x18] sm:$0xff] }
 0x172   :  { %v480_v26 = vadd.f32 %v477_v7, %v1089_v0 }
 0x174   :  { %v483_v12 = vsel %vm481_vm14, %v480_v26, 0.0  ;;  %v493_v62 = vmul.f32 %v480_v26, %v480_v26 }
 0x175   :  { %v484_v13 = vadd.f32 %v483_v12, %v482_v10  ;;  %v1548_v10 = vpop.permute.xlu1 %555  ;;  %v1550_v12 = vpop.permute.xlu2 %550 }
 0x176   :  { %v495_v18 = vsel %vm481_vm14, %v493_v62, 0.0 }
 0x177   :  { %v485_v2 = vrot.slane %v484_v13, 4  ;;  %v496_v20 = vadd.f32 %v495_v18, %v494_v14 }
 0x179   :  { %v486_v16 = vadd.f32 %v485_v2, %v484_v13  ;;  %v497_v21 = vrot.slane %v496_v20, 4 }
 0x17b   :  { %v487_v25 = vrot.slane %v486_v16, 2  ;;  %v498_v42 = vadd.f32 %v497_v21, %v496_v20 }
 0x17d   :  { %v488_v30 = vadd.f32 %v487_v25, %v486_v16  ;;  %v499_v38 = vrot.slane %v498_v42, 2 }
 0x17f   :  { %v489_v31 = vrot.slane %v488_v30, 1  ;;  %v500_v0 = vadd.f32 %v499_v38, %v498_v42  ;;  %v1026_v42 = vmov 2   ;;  %v1027_v38 = vmov 3  }
 0x180   :  { %954 = vset.pattern.permute.xlu1 %v1026_v42  ;;  %953 = vset.pattern.permute.xlu0 %v1026_v42 }
 0x181   :  { %v490_v32 = vadd.f32 %v489_v31, %v488_v30  ;;  %v501_v22 = vrot.slane %v500_v0, 1  ;;  %694 = vperm.xlu1 %954, %v1169_v19   ;;  %690 = vperm.xlu0 %953, %v1160_v17  }
 0x182   :  { %955 = vset.pattern.permute.xlu2 %v1027_v38 }
 0x183   :  { %v491_v61 = vmul.f32 0.0625, %v490_v32  ;;  %v502_v15 = vadd.f32 %v501_v22, %v500_v0  ;;  %v1563_v0 = vld [vmem:[%s1680_s7] sm:$0xff]  ;;  %700 = vperm.xlu2 %955, %v1160_v17   ;;  %v1574_v32 = vld [vmem:[%s1680_s7 + $0x8] sm:$0xff]  ;;  %v1587_v22 = vpop.permute.xlu2 %615  ;;  %s1028_s7 = smov [#allocation2]  }
 0x184   :  { %s889_s29 = sshll.u32 %s1028_s7, 4  ;;  %s890_s29 = int_to_ptr.vmem [resolvable:$true] %s889_s29 }
 0x185   :  { %v503_v40 = vmul.f32 0.0625, %v502_v15  ;;  %v504_v28 = vmul.f32 %v491_v61, %v491_v61  ;;  %v507_v3 = vsub.f32 %v480_v26, %v491_v61  ;;  %v506_v51 = vsub.f32 %v479_v58, %v491_v61  ;;  %v1535_v58 = vld [vmem:[%s1678_s5 + $0x10] sm:$0xff]  ;;  %v1546_v26 = vpop.permute.xlu0 %560 }
 0x187   :  { %v505_v27 = vsub.f32 %v503_v40, %v504_v28 }
 0x189   :  { %v508_v35 = vadd.f32 1e-05, %v505_v27  ;;  %956 = vset.pattern.permute.xlu1 %v1027_v38  ;;  %957 = vset.pattern.permute.xlu0 %v1027_v38 }
 0x18a   :  { %704 = vperm.xlu1 %956, %v1169_v19  }
 0x18b   :  { %990 = vrsqrt.f32 %v508_v35  ;;  %vm515_vm5 = vweird.f32 %v508_v35 }
 0x18d   :  { %v1555_v16 = vpop.permute.xlu0 %545 }
 0x191   :  { %v991_v54 = vpop.eup %990 }
 0x192   :  { %v510_v39 = vmul.f32 %v991_v54, %v508_v35  ;;  %vm516_vm6 = vweird.f32 %v991_v54 }
 0x193   :  { %vm517_vm11 = vmor %vm515_vm5, %vm516_vm6 }
 0x194   :  { %v511_v50 = vmul.f32 %v991_v54, %v510_v39  ;;  %vm1729_vm5 = vmmov %vm1723_vm2 }
 0x196   :  { %v512_v23 = vmul.f32 0.5, %v511_v50 }
 0x198   :  { %v513_v33 = vsub.f32 1.5, %v512_v23 }
 0x19a   :  { %v514_v43 = vmul.f32 %v991_v54, %v513_v33 }
 0x19c   :  { %v518_v4 = vsel %vm517_vm11, %v991_v54, %v514_v43  ;;  %vm1730_vm11 = vmmov %vm1723_vm2 }
 0x19d   :  { %v519_v5 = vmul.f32 %v518_v4, %v506_v51  ;;  %v520_v36 = vmul.f32 %v518_v4, %v507_v3 }
 0x19f   :  { %v531_v52 = vmul.f32 %v1508_v49, %v519_v5  ;;  %v532_v53 = vmul.f32 %v1500_v1, %v520_v36 }
 0x1a1   :  { %v542_v11 = vadd.f32 %v1510_v45, %v532_v53  ;;  %v541_v24 = vadd.f32 %v1514_v55, %v531_v52 }
 0x1a3   :  { %589 = vmatpush.msrb.mxu2 %v542_v11  ;;  %937 = vmatpush.msra.mxu3 %v542_v11 }
 0x1a5   :  { %590 = vmatpush.msrb.mxu2 %v541_v24  ;;  %938 = vmatpush.msra.mxu3 %v541_v24 }
 0x1a6   :  { %919 = vmatmul.msk.f32.vlgmr.msrb.gmra.mxu2 %vm1723_vm2, %v1521_v41  ;;  %920 = vmatmul.msk.f32.vlgmr.msra.gmra.mxu3 %vm1724_vm4, %v1526_v37  ;;  %vm1731_vm4 = vmmov %vm1723_vm2 }
 0x1ae   :  { %921 = vmatmul.msk.f32.gmra.mxu3 %vm1725_vm7, %v1535_v58 }
 0x1b6   :  { %922 = vmatmul.msk.f32.gmra.mxu3 %vm1726_vm13, %v1542_v63 }
 0x229   :  { %v595_v7 = vpop.f32.mrf.mxu3  ;;  %v592_v18 = vpop.f32.mrf.mxu2 }
 0x22a   :  { %v596_v2 = vadd.f32 %v595_v7, %v1550_v12  ;;  %v593_v21 = vadd.f32 %v592_v18, %v1555_v16 }
 0x22c   :  { %v605_v30 = vmax.f32 %v596_v2, 0.0  ;;  %v604_v31 = vmax.f32 %v593_v21, 0.0 }
 0x231   :  { %v598_v9 = vpop.f32.mrf.mxu3 }
 0x232   :  { %v599_v13 = vadd.f32 %v598_v9, %v1548_v10 }
 0x234   :  { %v606_v25 = vmax.f32 %v599_v13, 0.0 }
 0x239   :  { %v601_v62 = vpop.f32.mrf.mxu3 }
 0x23a   :  { %v602_v14 = vadd.f32 %v601_v62, %v1546_v26 }
 0x23c   :  { %v607_v20 = vmax.f32 %v602_v14, 0.0 }
 0x23e   :  { %637 = vmatpush.msra.mxu2 %v607_v20 }
 0x240   :  { %638 = vmatpush.msra.mxu2 %v606_v25 }
 0x242   :  { %639 = vmatpush.msra.mxu2 %v605_v30 }
 0x244   :  { %640 = vmatpush.msra.mxu2 %v604_v31 }
 0x245   :  { %923 = vmatmul.msk.f32.vlgmr.msra.gmra.mxu2 %vm618_vm8, %v1563_v0 }
 0x246   :  { %725 = vmatpush.msrb.mxu2 %v1465_v34  ;;  %v1582_v34 = vpop.permute.xlu1 %610 }
 0x248   :  { %726 = vmatpush.msrb.mxu2 %v1462_v56 }
 0x24d   :  { %924 = vmatmul.msk.f32.gmra.mxu2 %vm618_vm8, %v1574_v32 }
 0x255   :  { %925 = vmatmul.msk.f32.vlgmr.msrb.gmra.mxu2 %vm1727_vm10, %v1471_v57 }
 0x25d   :  { %926 = vmatmul.msk.f32.gmra.mxu2 %vm1728_vm9, %v1478_v46 }
 0x2c8   :  { %v642_v17 = vpop.f32.mrf.mxu2 }
 0x2c9   :  { %v643_v19 = vadd.f32 %v642_v17, %v1582_v34 }
 0x2cb   :  { %v1585_v56 = vadd.f32 %v643_v19, %v541_v24 }
 0x2cd   :  { %v660_v40 = vmul.f32 %v1585_v56, %v1585_v56  ;;  %v650_v57 = vsel %vm481_vm14, %v1585_v56, 0.0 }
 0x2cf   :  { %v662_v54 = vsel %vm481_vm14, %v660_v40, 0.0 }
 0x2d0   :  { %v645_v61 = vpop.f32.mrf.mxu2 }
 0x2d1   :  { %v646_v15 = vadd.f32 %v645_v61, %v1587_v22 }
 0x2d3   :  { %v1592_v28 = vadd.f32 %v646_v15, %v542_v11 }
 0x2d5   :  { %v651_v46 = vsel %vm481_vm14, %v1592_v28, 0.0  ;;  %v661_v27 = vmul.f32 %v1592_v28, %v1592_v28 }
 0x2d6   :  { %v652_v35 = vadd.f32 %v651_v46, %v650_v57 }
 0x2d7   :  { %v663_v39 = vsel %vm481_vm14, %v661_v27, 0.0 }
 0x2d8   :  { %v653_v50 = vrot.slane %v652_v35, 4  ;;  %v664_v23 = vadd.f32 %v663_v39, %v662_v54  ;;  %v728_v29 = vpop.f32.mrf.mxu2 }
 0x2d9   :  { %v729_v43 = vadd.f32 %v728_v29, %v1482_v47 }
 0x2da   :  { %v654_v59 = vadd.f32 %v653_v50, %v652_v35  ;;  %v665_v33 = vrot.slane %v664_v23, 4 }
 0x2db   :  { %v1604_v48 = vadd.f32 %v1123_v8, %v729_v43 }
 0x2dc   :  { %v655_v3 = vrot.slane %v654_v59, 2  ;;  %v666_v51 = vadd.f32 %v665_v33, %v664_v23  ;;  %v1620_v23 = vpop.permute.xlu1 %694 }
 0x2dd   :  { %v748_v7 = vmul.f32 %v1604_v48, %v1604_v48  ;;  %v738_v13 = vsel %vm481_vm14, %v1604_v48, 0.0 }
 0x2de   :  { %v656_v4 = vadd.f32 %v655_v3, %v654_v59  ;;  %v667_v44 = vrot.slane %v666_v51, 2 }
 0x2df   :  { %v750_v20 = vsel %vm481_vm14, %v748_v7, 0.0  ;;  %v1626_v7 = vpop.permute.xlu2 %700 }
 0x2e0   :  { %v668_v5 = vadd.f32 %v667_v44, %v666_v51  ;;  %v731_v36 = vpop.f32.mrf.mxu2  ;;  %v657_v52 = vrot.slane %v656_v4, 1 }
 0x2e1   :  { %v732_v53 = vadd.f32 %v731_v36, %v1486_v60 }
 0x2e2   :  { %v669_v11 = vrot.slane %v668_v5, 1  ;;  %v658_v24 = vadd.f32 %v657_v52, %v656_v4 }
 0x2e3   :  { %v1610_v9 = vadd.f32 %v1111_v6, %v732_v53  ;;  %v1624_v53 = vpop.permute.xlu0 %690 }
 0x2e4   :  { %v659_v47 = vmul.f32 0.0625, %v658_v24  ;;  %v670_v62 = vadd.f32 %v669_v11, %v668_v5 }
 0x2e5   :  { %v739_v8 = vsel %vm481_vm14, %v1610_v9, 0.0  ;;  %v749_v14 = vmul.f32 %v1610_v9, %v1610_v9 }
 0x2e6   :  { %v740_v60 = vadd.f32 %v739_v8, %v738_v13  ;;  %v671_v18 = vmul.f32 0.0625, %v670_v62  ;;  %v672_v2 = vmul.f32 %v659_v47, %v659_v47  ;;  %v675_v5 = vsub.f32 %v1592_v28, %v659_v47  ;;  %v1628_v62 = vpop.permute.xlu1 %704 }
 0x2e7   :  { %v751_v21 = vsel %vm481_vm14, %v749_v14, 0.0  ;;  %v674_v36 = vsub.f32 %v1585_v56, %v659_v47 }
 0x2e8   :  { %v741_v6 = vrot.slane %v740_v60, 4  ;;  %v752_v25 = vadd.f32 %v751_v21, %v750_v20  ;;  %v673_v42 = vsub.f32 %v671_v18, %v672_v2 }
 0x2ea   :  { %v742_v30 = vadd.f32 %v741_v6, %v740_v60  ;;  %v753_v38 = vrot.slane %v752_v25, 4  ;;  %v676_v31 = vadd.f32 1e-05, %v673_v42 }
 0x2ec   :  { %v743_v17 = vrot.slane %v742_v30, 2  ;;  %v754_v19 = vadd.f32 %v753_v38, %v752_v25  ;;  %992 = vrsqrt.f32 %v676_v31  ;;  %vm683_vm15 = vweird.f32 %v676_v31 }
 0x2ee   :  { %v744_v61 = vadd.f32 %v743_v17, %v742_v30  ;;  %v755_v15 = vrot.slane %v754_v19, 2 }
 0x2f0   :  { %v745_v40 = vrot.slane %v744_v61, 1  ;;  %v756_v57 = vadd.f32 %v755_v15, %v754_v19 }
 0x2f2   :  { %v993_v46 = vpop.eup %992  ;;  %v746_v27 = vadd.f32 %v745_v40, %v744_v61  ;;  %v757_v35 = vrot.slane %v756_v57, 1 }
 0x2f3   :  { %v678_v54 = vmul.f32 %v993_v46, %v676_v31  ;;  %vm684_vm3 = vweird.f32 %v993_v46 }
 0x2f4   :  { %v747_v39 = vmul.f32 0.0625, %v746_v27  ;;  %v758_v50 = vadd.f32 %v757_v35, %v756_v57  ;;  %vm685_vm1 = vmor %vm683_vm15, %vm684_vm3 }
 0x2f5   :  { %v679_v29 = vmul.f32 %v993_v46, %v678_v54 }
 0x2f6   :  { %v759_v59 = vmul.f32 0.0625, %v758_v50  ;;  %v760_v33 = vmul.f32 %v747_v39, %v747_v39  ;;  %v763_v21 = vsub.f32 %v1610_v9, %v747_v39  ;;  %v762_v6 = vsub.f32 %v1604_v48, %v747_v39 }
 0x2f7   :  { %v680_v43 = vmul.f32 0.5, %v679_v29 }
 0x2f8   :  { %v761_v3 = vsub.f32 %v759_v59, %v760_v33 }
 0x2f9   :  { %v681_v51 = vsub.f32 1.5, %v680_v43 }
 0x2fa   :  { %v764_v4 = vadd.f32 1e-05, %v761_v3 }
 0x2fb   :  { %v682_v44 = vmul.f32 %v993_v46, %v681_v51 }
 0x2fc   :  { %994 = vrsqrt.f32 %v764_v4  ;;  %vm771_vm12 = vweird.f32 %v764_v4 }
 0x2fd   :  { %v686_v52 = vsel %vm685_vm1, %v993_v46, %v682_v44 }
 0x2fe   :  { %v688_v11 = vmul.f32 %v686_v52, %v675_v5  ;;  %v687_v24 = vmul.f32 %v686_v52, %v674_v36 }
 0x300   :  { %v698_v13 = vmul.f32 %v1620_v23, %v688_v11  ;;  %v697_v8 = vmul.f32 %v1624_v53, %v687_v24 }
 0x302   :  { %v995_v14 = vpop.eup %994  ;;  %v707_v28 = vadd.f32 %v1626_v7, %v697_v8  ;;  %v708_v60 = vadd.f32 %v1628_v62, %v698_v13 }
 0x303   :  { %v766_v56 = vmul.f32 %v995_v14, %v764_v4  ;;  %vm772_vm0 = vweird.f32 %v995_v14 }
 0x304   :  { %709 = vst.msk [vmem:[#allocation2] sm:$0xff] %vm481_vm14, %v707_v28  ;;  %vm773_vm6 = vmor %vm771_vm12, %vm772_vm0 }
 0x305   :  { %710 = vst.msk [vmem:[#allocation2 + $0x8] sm:$0xff] %vm481_vm14, %v708_v60  ;;  %v767_v47 = vmul.f32 %v995_v14, %v766_v56 }
 0x307   :  { %v768_v18 = vmul.f32 0.5, %v767_v47 }
 0x309   :  { %v769_v2 = vsub.f32 1.5, %v768_v18 }
 0x30b   :  { %v770_v20 = vmul.f32 %v995_v14, %v769_v2 }
 0x30d   :  { %v774_v25 = vsel %vm773_vm6, %v995_v14, %v770_v20 }
 0x30e   :  { %v776_v42 = vmul.f32 %v774_v25, %v763_v21  ;;  %v775_v30 = vmul.f32 %v774_v25, %v762_v6 }
 0x310   :  { %v778_v38 = vmul.f32 %v776_v42, %v1500_v1  ;;  %v777_v31 = vmul.f32 %v775_v30, %v1508_v49 }
 0x312   :  { %v780_v17 = vadd.f32 %v778_v38, %v1510_v45  ;;  %v779_v19 = vadd.f32 %v777_v31, %v1514_v55 }
 0x314   :  { %795 = vmatpush.msrb.mxu3 %v780_v17 }
 0x316   :  { %796 = vmatpush.msrb.mxu3 %v779_v19 }
 0x317   :  { %929 = vmatmul.msk.f32.vlgmr.msrb.gmra.mxu3 %vm1729_vm5, %v1521_v41 }
 0x31f   :  { %930 = vmatmul.msk.f32.gmra.mxu3 %vm1730_vm11, %v1526_v37 }
 0x327   :  { %931 = vmatmul.msk.f32.gmra.mxu3 %vm1723_vm2, %v1535_v58 }
 0x32f   :  { %932 = vmatmul.msk.f32.gmra.mxu3 %vm1731_vm4, %v1542_v63 }
 0x39a   :  { %v798_v1 = vpop.f32.mrf.mxu3 }
 0x39b   :  { %v799_v15 = vadd.f32 %v798_v1, %v1555_v16 }
 0x39d   :  { %v810_v58 = vmax.f32 %v799_v15, 0.0 }
 0x3a2   :  { %v801_v49 = vpop.f32.mrf.mxu3 }
 0x3a3   :  { %v802_v61 = vadd.f32 %v801_v49, %v1550_v12 }
 0x3a5   :  { %v811_v40 = vmax.f32 %v802_v61, 0.0 }
 0x3aa   :  { %v804_v48 = vpop.f32.mrf.mxu3 }
 0x3ab   :  { %v805_v9 = vadd.f32 %v804_v48, %v1548_v10 }
 0x3ad   :  { %v812_v37 = vmax.f32 %v805_v9, 0.0 }
 0x3b2   :  { %v807_v45 = vpop.f32.mrf.mxu3 }
 0x3b3   :  { %v808_v55 = vadd.f32 %v807_v45, %v1546_v26 }
 0x3b5   :  { %v813_v41 = vmax.f32 %v808_v55, 0.0 }
 0x3b7   :  { %826 = vmatpush.msrb.mxu0 %v813_v41 }
 0x3b9   :  { %827 = vmatpush.msrb.mxu0 %v812_v37 }
 0x3bb   :  { %828 = vmatpush.msrb.mxu0 %v811_v40 }
 0x3bd   :  { %829 = vmatpush.msrb.mxu0 %v810_v58 }
 0x3be   :  { %933 = vmatmul.msk.f32.vlgmr.msrb.gmra.mxu0 %vm618_vm8, %v1563_v0 }
 0x3c6   :  { %934 = vmatmul.msk.f32.gmra.mxu0 %vm618_vm8, %v1574_v32 }
 0x43b   :  { %v831_v63 = vpop.f32.mrf.mxu0 }
 0x43c   :  { %v832_v26 = vadd.f32 %v831_v63, %v1582_v34 }
 0x43e   :  { %v837_v10 = vadd.f32 %v832_v26, %v779_v19 }
 0x440   :  { %v849_v57 = vmul.f32 %v837_v10, %v837_v10  ;;  %v839_v27 = vsel %vm481_vm14, %v837_v10, 0.0 }
 0x442   :  { %v851_v0 = vsel %vm481_vm14, %v849_v57, 0.0 }
 0x443   :  { %v834_v12 = vpop.f32.mrf.mxu0 }
 0x444   :  { %v835_v16 = vadd.f32 %v834_v12, %v1587_v22 }
 0x446   :  { %v838_v46 = vadd.f32 %v835_v16, %v780_v17 }
 0x448   :  { %v840_v35 = vsel %vm481_vm14, %v838_v46, 0.0  ;;  %v850_v54 = vmul.f32 %v838_v46, %v838_v46 }
 0x449   :  { %v841_v39 = vadd.f32 %v840_v35, %v839_v27 }
 0x44a   :  { %v852_v50 = vsel %vm481_vm14, %v850_v54, 0.0 }
 0x44b   :  { %v842_v32 = vrot.slane %v841_v39, 4  ;;  %v853_v29 = vadd.f32 %v852_v50, %v851_v0 }
 0x44d   :  { %v843_v59 = vadd.f32 %v842_v32, %v841_v39  ;;  %v854_v34 = vrot.slane %v853_v29, 4 }
 0x44f   :  { %v844_v33 = vrot.slane %v843_v59, 2  ;;  %v855_v43 = vadd.f32 %v854_v34, %v853_v29 }
 0x451   :  { %v845_v3 = vadd.f32 %v844_v33, %v843_v59  ;;  %v856_v22 = vrot.slane %v855_v43, 2 }
 0x453   :  { %v846_v51 = vrot.slane %v845_v3, 1  ;;  %v857_v4 = vadd.f32 %v856_v22, %v855_v43 }
 0x455   :  { %v847_v44 = vadd.f32 %v846_v51, %v845_v3  ;;  %v858_v5 = vrot.slane %v857_v4, 1 }
 0x457   :  { %v848_v36 = vmul.f32 0.0625, %v847_v44  ;;  %v859_v52 = vadd.f32 %v858_v5, %v857_v4 }
 0x459   :  { %v860_v11 = vmul.f32 0.0625, %v859_v52  ;;  %v861_v24 = vmul.f32 %v848_v36, %v848_v36  ;;  %v863_v2 = vsub.f32 %v837_v10, %v848_v36  ;;  %v864_v20 = vsub.f32 %v838_v46, %v848_v36 }
 0x45b   :  { %v862_v13 = vsub.f32 %v860_v11, %v861_v24 }
 0x45d   :  { %v865_v8 = vadd.f32 1e-05, %v862_v13 }
 0x45f   :  { %996 = vrsqrt.f32 %v865_v8  ;;  %vm872_vm13 = vweird.f32 %v865_v8 }
 0x465   :  { %v997_v14 = vpop.eup %996 }
 0x466   :  { %v867_v28 = vmul.f32 %v997_v14, %v865_v8  ;;  %vm873_vm7 = vweird.f32 %v997_v14 }
 0x467   :  { %vm874_vm8 = vmor %vm872_vm13, %vm873_vm7 }
 0x468   :  { %v868_v60 = vmul.f32 %v997_v14, %v867_v28 }
 0x46a   :  { %v869_v56 = vmul.f32 0.5, %v868_v60 }
 0x46c   :  { %v870_v47 = vsub.f32 1.5, %v869_v56 }
 0x46e   :  { %v871_v18 = vmul.f32 %v997_v14, %v870_v47 }
 0x470   :  { %v875_v21 = vsel %vm874_vm8, %v997_v14, %v871_v18 }
 0x471   :  { %v876_v6 = vmul.f32 %v875_v21, %v863_v2  ;;  %v877_v25 = vmul.f32 %v875_v21, %v864_v20 }
 0x473   :  { %v878_v42 = vmul.f32 %v876_v6, %v1624_v53  ;;  %v879_v30 = vmul.f32 %v877_v25, %v1620_v23 }
 0x475   :  { %v880_v38 = vadd.f32 %v878_v42, %v1626_v7  ;;  %v881_v31 = vadd.f32 %v879_v30, %v1628_v62 }
 0x477   :  { %883 = vst.msk [vmem:[#allocation2 + $0x10] sm:$0xff] %vm481_vm14, %v880_v38 }
 0x478   :  { %884 = vst.msk [vmem:[#allocation2 + $0x18] sm:$0xff] %vm481_vm14, %v881_v31 }
 0x479   :  { %897 = dma.vmem_to_hbm [thread:$0]  %s890_s29, 512, %s892_s9, [#allocation3], %s1029_s12, %s1029_s12, %s1030_s1  }
 0x47a   :  { %1022 = dma.done.wait [#allocation3], 512  }
 0x47b   :  { %1023 = vsyncadd [#allocation3], 4294966784 }
 0x47c   :  { %902 = vsyncpa [#allocation3], 1 }

</bundles_post_ra>
